<compile_context>
chip_gen: v7x
topology: tpu7x:2x2x1
jax: 0.10.0
libtpu: 0.0.40
codegen_flags: <defaults>
</compile_context>

<pallas_src>
import jax
import jax.numpy as jnp
from jax.experimental import pallas as pl
from jax.experimental.pallas import tpu as pltpu

_LANE = 128
_PER_BUFFER_BUDGET = 16 * 1024 * 1024   # bytes for one streamed x tile


def _round_up(x, m):
    return ((x + m - 1) // m) * m


def _fused_head_kernel(x_ref, w_ref, b_ref, logits_ref, probas_ref):
    # Global average pool is folded into w_ref (bf16, 1/(H*W) pre-applied), so
    # the whole head is one lane-dense MXU matmul with f32 accumulation.
    # The bf16 cast of x happens here on the VMEM->MXU path, NOT in the
    # wrapper, so no extra HBM read/write of x is introduced.
    logits = jnp.dot(
        x_ref[...].astype(jnp.bfloat16), w_ref[...],
        preferred_element_type=jnp.float32,
    )
    logits = logits + b_ref[...]          # padded classes carry a -1e30 bias
    logits_ref[...] = logits.astype(logits_ref.dtype)

    # Numerically-stable softmax along the lane-padded class axis. Padded
    # classes have logit ~ -1e30 -> exp == 0, so they do not perturb the sum.
    # Exact divide so each row sums to 1 within f32 rounding.
    m = jnp.max(logits, axis=-1, keepdims=True)
    e = jnp.exp(logits - m)
    denom = jnp.sum(e, axis=-1, keepdims=True)
    probas_ref[...] = (e / denom).astype(probas_ref.dtype)


def _vmem_capacity_bytes():
    try:
        return int(pltpu.get_tpu_info().vmem_capacity_bytes)
    except Exception:
        return 128 * 1024 * 1024          # v5e/v6e default; v7x has 64 MiB


def _pick_batch_tile(n, row_bytes, per_buffer_budget=_PER_BUFFER_BUDGET):
    """Largest multiple-of-8 batch tile under the per-buffer budget (<=1024
    rows); when the batch is big enough, cap it so the "parallel" grid has at
    least 2 steps so both v7x TensorCores get work (near-neutral on v5e/v6e)."""
    rows = (int(per_buffer_budget) // int(row_bytes)) // 8 * 8
    rows = int(min(max(rows, 8), 1024))
    if n >= 16:
        rows = min(rows, max(8, _round_up(pl.cdiv(n, 2), 8)))
    if rows >= n:
        return n                          # full-extent block dim is always legal
    return rows


def prepare_head_params(weight, bias, H, W):
    """Hoisted once-per-parameter-set preparation (perf feedback):
      * fold the 1/(H*W) average pool into the Linear weight,
      * expand it to the NCHW-flattened feature axis (index = c*H*W + hw),
      * pad the class axis to a full 128-lane group (unmasked stores),
      * cast the MXU weight operand to bf16 (f32 accumulation in-kernel).
    Returns (w_big_bf16 of shape (C*H*W, NCP), bias_padded_f32 of (1, NCP))."""
    num_classes, C = weight.shape
    D = C * H * W
    ncp = _round_up(max(num_classes, 1), _LANE)

    w = weight.astype(jnp.float32).T / float(H * W)        # (C, num_classes)
    w_big = jnp.repeat(w, H * W, axis=0)                    # (D, num_classes)
    w_pad = jnp.zeros((D, ncp), jnp.float32).at[:, :num_classes].set(w_big)
    w_pad = w_pad.astype(jnp.bfloat16)

    # Padded classes get a hugely negative bias so softmax assigns them 0.
    b_pad = jnp.full((1, ncp), -1e30, dtype=jnp.float32)
    b_pad = b_pad.at[0, :num_classes].set(bias.astype(jnp.float32))
    return w_pad, b_pad


def _build_head_call(N, D, NCP, tn, vmem_limit, resident_kwargs):
    return pl.pallas_call(
        _fused_head_kernel,
        out_shape=(
            jax.ShapeDtypeStruct((N, NCP), jnp.float32),
            jax.ShapeDtypeStruct((N, NCP), jnp.float32),
        ),
        grid_spec=pl.GridSpec(
            grid=(pl.cdiv(N, tn),),
            in_specs=[
                # streamed x tiles (double-buffered by the BlockSpec pipeline)
                pl.BlockSpec((tn, D), lambda i: (i, 0)),
                # resident folded bf16 weight + bias (constant index_map)
                pl.BlockSpec((D, NCP), lambda i: (0, 0), **resident_kwargs),
                pl.BlockSpec((1, NCP), lambda i: (0, 0), **resident_kwargs),
            ],
            out_specs=[
                pl.BlockSpec((tn, NCP), lambda i: (i, 0)),
                pl.BlockSpec((tn, NCP), lambda i: (i, 0)),
            ],
        ),
        compiler_params=pltpu.CompilerParams(
            dimension_semantics=("parallel",),   # batch axis -> both v7x TCs
            vmem_limit_bytes=vmem_limit,
        ),
    )


def resnet56_server_v3_forward(x, w_big, b_pad, num_classes):
    """x: (N, C, H, W) NCHW; (w_big, b_pad) from prepare_head_params.
    Returns ([logits], probas), each (N, num_classes), matching the module."""
    N, C, H, W = x.shape
    D = C * H * W
    NCP = w_big.shape[1]

    # Lane-dense input view. Deliberately NOT cast to bf16 here: the head is
    # HBM-read bound on x, and a standalone convert would add a full extra
    # read+write of x; the bf16 cast happens in-kernel instead.
    x2d = x.reshape(N, D)

    tn = _pick_batch_tile(N, D * x2d.dtype.itemsize)

    # VMEM: double-buffered x stream + resident bf16 weight + lane-padded
    # outputs + headroom; capped relative to this generation's capacity so the
    # same sizing works on 64 MiB (v7x) and 128 MiB (v5e/v6e) parts.
    needed = (2 * tn * D * x2d.dtype.itemsize        # x tiles (2 buffers)
              + 2 * D * NCP * 2                      # weight (<=2 bf16 buffers)
              + 2 * 2 * tn * NCP * 4                 # two f32 outputs, 2 buffers
              + (4 << 20))                           # headroom
    cap = int(0.7 * _vmem_capacity_bytes())
    vmem_limit = int(min(max(needed, 32 << 20), cap))

    args = (x2d, w_big, b_pad)
    try:
        call = _build_head_call(N, D, NCP, tn, vmem_limit,
                                dict(pipeline_mode=pl.Buffered(1)))
        logits_pad, probas_pad = call(*args)
    except Exception:
        # pipeline_mode / Buffered(1) unsupported here: fall back to default
        # double-buffering of the (small) resident operands.
        call = _build_head_call(N, D, NCP, tn, vmem_limit, {})
        logits_pad, probas_pad = call(*args)

    logits = logits_pad[:, :num_classes]
    probas = probas_pad[:, :num_classes]
    return [logits], probas


def init_params(key, in_features=64, num_classes=10):
    """Mirrors _weights_init: kaiming_normal_ on the Linear weight, PyTorch
    default uniform init on the bias."""
    kw, kb = jax.random.split(key)
    std = (2.0 / in_features) ** 0.5
    weight = std * jax.random.normal(kw, (num_classes, in_features), dtype=jnp.float32)
    bound = 1.0 / (in_features ** 0.5)
    bias = jax.random.uniform(kb, (num_classes,), minval=-bound, maxval=bound,
                              dtype=jnp.float32)
    return weight, bias


if __name__ == "__main__":
    key = jax.random.PRNGKey(0)
    k_x, k_p = jax.random.split(key)

    # Channels must be 64 to match Linear(64 * expansion, 10) (expansion = 1);
    # 8x8 is the final CIFAR feature-map size feeding this head.
    N, C, H, W = 2, 64, 8, 8
    num_classes = 10
    x = jax.random.normal(k_x, (N, C, H, W), dtype=jnp.float32)
    weight, bias = init_params(k_p, in_features=C, num_classes=num_classes)

    # Hoisted once (perf feedback): the folded bf16 weight is NOT rebuilt on
    # every forward call.
    w_big, b_pad = prepare_head_params(weight, bias, H, W)

    logits_list, probas = resnet56_server_v3_forward(x, w_big, b_pad, num_classes)
    logits = logits_list[0]
    jax.block_until_ready(logits)
    jax.block_until_ready(probas)

    # Plain-JAX reference.
    pooled_ref = jnp.mean(x.reshape(N, C, H * W), axis=-1)
    logits_ref = pooled_ref @ weight.T + bias
    probas_ref = jax.nn.softmax(logits_ref, axis=1)

    assert logits.shape == (N, num_classes) and probas.shape == (N, num_classes)
    # bf16 MXU operands (f32 accumulation) -> tolerance loosened vs pure f32.
    assert jnp.allclose(logits, logits_ref, atol=1e-2), "logits mismatch"
    assert jnp.allclose(probas, probas_ref, atol=1e-2), "probas mismatch"
    # Exact in-kernel divide -> each row sums to 1 within f32 rounding.
    assert jnp.allclose(jnp.sum(probas, axis=1), 1.0, atol=1e-3)

    print("KERNEL_OK")
</pallas_src>

<mosaic_0001>
module attributes {stable_mosaic.version = 11 : i64} {
  func.func @_fused_head_kernel(%arg0: i32, %arg1: memref<2x4096xf32, #tpu.memory_space<vmem>>, %arg2: memref<4096x128xbf16, #tpu.memory_space<vmem>>, %arg3: memref<1x128xf32, #tpu.memory_space<vmem>>, %arg4: memref<2x128xf32, #tpu.memory_space<vmem>>, %arg5: memref<2x128xf32, #tpu.memory_space<vmem>>) attributes {dimension_semantics = [#tpu.dimension_semantics<parallel>], iteration_bounds = array<i64: 1>, scalar_prefetch = 0 : i64, scratch_operands = 0 : i64, tpu.core_type = #tpu.core_type<tc>, window_params = [{transform_indices = @transform_0, window_bounds = array<i64: 2, 4096>}, {pipeline_mode = #tpu.pipeline_mode<synchronous>, transform_indices = @transform_1, window_bounds = array<i64: 4096, 128>}, {pipeline_mode = #tpu.pipeline_mode<synchronous>, transform_indices = @transform_2, window_bounds = array<i64: 1, 128>}, {transform_indices = @transform_3, window_bounds = array<i64: 2, 128>}, {transform_indices = @transform_4, window_bounds = array<i64: 2, 128>}]} {
    %c0 = arith.constant 0 : index
    %c0_0 = arith.constant 0 : index
    %0 = vector.load %arg1[%c0, %c0_0] : memref<2x4096xf32, #tpu.memory_space<vmem>>, vector<2x4096xf32>
    %1 = arith.truncf %0 : vector<2x4096xf32> to vector<2x4096xbf16>
    %c0_1 = arith.constant 0 : index
    %c0_2 = arith.constant 0 : index
    %2 = vector.load %arg2[%c0_1, %c0_2] : memref<4096x128xbf16, #tpu.memory_space<vmem>>, vector<4096x128xbf16>
    %cst = arith.constant dense<0.000000e+00> : vector<2x128xf32>
    %3 = tpu.matmul %1, %2, %cst {dimension_numbers = #tpu.dot_dimension_numbers<[1], [0], [0], [1], [0, 0, 1, 1], [], []>} : vector<2x4096xbf16>, vector<4096x128xbf16>, vector<2x128xf32> -> vector<2x128xf32>
    %c0_3 = arith.constant 0 : index
    %c0_4 = arith.constant 0 : index
    %4 = vector.load %arg3[%c0_3, %c0_4] : memref<1x128xf32, #tpu.memory_space<vmem>>, vector<1x128xf32>
    %5 = vector.broadcast %4 : vector<1x128xf32> to vector<2x128xf32>
    %6 = arith.addf %3, %5 : vector<2x128xf32>
    %c0_5 = arith.constant 0 : index
    %c0_6 = arith.constant 0 : index
    %7 = vector.load %arg4[%c0_5, %c0_6] : memref<2x128xf32, #tpu.memory_space<vmem>>, vector<2x128xf32>
    tpu.vector_store %arg4[%c0_5, %c0_6], %6 {strides = array<i32>} : memref<2x128xf32, #tpu.memory_space<vmem>>, vector<2x128xf32>,
    %cst_7 = arith.constant dense<0xFF800000> : vector<2xf32>
    %8 = vector.multi_reduction <maximumf>, %6, %cst_7 [1] : vector<2x128xf32> to vector<2xf32>
    %9 = vector.shape_cast %8 : vector<2xf32> to vector<2x1xf32>
    %10 = vector.broadcast %9 : vector<2x1xf32> to vector<2x128xf32>
    %11 = arith.subf %6, %10 : vector<2x128xf32>
    %12 = math.exp %11 : vector<2x128xf32>
    %cst_8 = arith.constant dense<0.000000e+00> : vector<2xf32>
    %13 = vector.multi_reduction <add>, %12, %cst_8 [1] : vector<2x128xf32> to vector<2xf32>
    %14 = vector.shape_cast %13 : vector<2xf32> to vector<2x1xf32>
    %15 = vector.broadcast %14 : vector<2x1xf32> to vector<2x128xf32>
    %16 = arith.divf %12, %15 : vector<2x128xf32>
    %c0_9 = arith.constant 0 : index
    %c0_10 = arith.constant 0 : index
    %17 = vector.load %arg5[%c0_9, %c0_10] : memref<2x128xf32, #tpu.memory_space<vmem>>, vector<2x128xf32>
    tpu.vector_store %arg5[%c0_9, %c0_10], %16 {strides = array<i32>} : memref<2x128xf32, #tpu.memory_space<vmem>>, vector<2x128xf32>,
    return
  }
  func.func @transform_0(%arg0: i32) -> (i32, i32) {
    %c0_i32 = arith.constant 0 : i32
    %c0_i32_0 = arith.constant 0 : i32
    return %arg0, %c0_i32 : i32, i32
  }
  func.func @transform_1(%arg0: i32) -> (i32, i32) {
    %c0_i32 = arith.constant 0 : i32
    %c0_i32_0 = arith.constant 0 : i32
    %c0_i32_1 = arith.constant 0 : i32
    return %c0_i32, %c0_i32_0 : i32, i32
  }
  func.func @transform_2(%arg0: i32) -> (i32, i32) {
    %c0_i32 = arith.constant 0 : i32
    %c0_i32_0 = arith.constant 0 : i32
    %c0_i32_1 = arith.constant 0 : i32
    return %c0_i32, %c0_i32_0 : i32, i32
  }
  func.func @transform_3(%arg0: i32) -> (i32, i32) {
    %c0_i32 = arith.constant 0 : i32
    %c0_i32_0 = arith.constant 0 : i32
    return %arg0, %c0_i32 : i32, i32
  }
  func.func @transform_4(%arg0: i32) -> (i32, i32) {
    %c0_i32 = arith.constant 0 : i32
    %c0_i32_0 = arith.constant 0 : i32
    return %arg0, %c0_i32 : i32, i32
  }
}

module attributes {stable_mosaic.version = 11 : i64} {
  func.func @_fused_head_kernel(%arg0: i32, %arg1: memref<2x4096xf32, #tpu.memory_space<vmem>>, %arg2: memref<4096x128xbf16, #tpu.memory_space<vmem>>, %arg3: memref<1x128xf32, #tpu.memory_space<vmem>>, %arg4: memref<2x128xf32, #tpu.memory_space<vmem>>, %arg5: memref<2x128xf32, #tpu.memory_space<vmem>>) attributes {dimension_semantics = [#tpu.dimension_semantics<parallel>], iteration_bounds = array<i64: 1>, scalar_prefetch = 0 : i64, scratch_operands = 0 : i64, tpu.core_type = #tpu.core_type<tc>, window_params = [{transform_indices = @transform_0, window_bounds = array<i64: 2, 4096>}, {pipeline_mode = #tpu.pipeline_mode<synchronous>, transform_indices = @transform_1, window_bounds = array<i64: 4096, 128>}, {pipeline_mode = #tpu.pipeline_mode<synchronous>, transform_indices = @transform_2, window_bounds = array<i64: 1, 128>}, {transform_indices = @transform_3, window_bounds = array<i64: 2, 128>}, {transform_indices = @transform_4, window_bounds = array<i64: 2, 128>}]} {
    %c0 = arith.constant 0 : index
    %c0_0 = arith.constant 0 : index
    %0 = vector.load %arg1[%c0, %c0_0] : memref<2x4096xf32, #tpu.memory_space<vmem>>, vector<2x4096xf32>
    %1 = arith.truncf %0 : vector<2x4096xf32> to vector<2x4096xbf16>
    %c0_1 = arith.constant 0 : index
    %c0_2 = arith.constant 0 : index
    %2 = vector.load %arg2[%c0_1, %c0_2] : memref<4096x128xbf16, #tpu.memory_space<vmem>>, vector<4096x128xbf16>
    %cst = arith.constant dense<0.000000e+00> : vector<2x128xf32>
    %3 = tpu.matmul %1, %2, %cst {dimension_numbers = #tpu.dot_dimension_numbers<[1], [0], [0], [1], [0, 0, 1, 1], [], []>} : vector<2x4096xbf16>, vector<4096x128xbf16>, vector<2x128xf32> -> vector<2x128xf32>
    %c0_3 = arith.constant 0 : index
    %c0_4 = arith.constant 0 : index
    %4 = vector.load %arg3[%c0_3, %c0_4] : memref<1x128xf32, #tpu.memory_space<vmem>>, vector<1x128xf32>
    %5 = vector.broadcast %4 : vector<1x128xf32> to vector<2x128xf32>
    %6 = arith.addf %3, %5 : vector<2x128xf32>
    %c0_5 = arith.constant 0 : index
    %c0_6 = arith.constant 0 : index
    %7 = vector.load %arg4[%c0_5, %c0_6] : memref<2x128xf32, #tpu.memory_space<vmem>>, vector<2x128xf32>
    tpu.vector_store %arg4[%c0_5, %c0_6], %6 {strides = array<i32>} : memref<2x128xf32, #tpu.memory_space<vmem>>, vector<2x128xf32>,
    %cst_7 = arith.constant dense<0xFF800000> : vector<2xf32>
    %8 = vector.multi_reduction <maximumf>, %6, %cst_7 [1] : vector<2x128xf32> to vector<2xf32>
    %9 = vector.shape_cast %8 : vector<2xf32> to vector<2x1xf32>
    %10 = vector.broadcast %9 : vector<2x1xf32> to vector<2x128xf32>
    %11 = arith.subf %6, %10 : vector<2x128xf32>
    %12 = math.exp %11 : vector<2x128xf32>
    %cst_8 = arith.constant dense<0.000000e+00> : vector<2xf32>
    %13 = vector.multi_reduction <add>, %12, %cst_8 [1] : vector<2x128xf32> to vector<2xf32>
    %14 = vector.shape_cast %13 : vector<2xf32> to vector<2x1xf32>
    %15 = vector.broadcast %14 : vector<2x1xf32> to vector<2x128xf32>
    %16 = arith.divf %12, %15 : vector<2x128xf32>
    %c0_9 = arith.constant 0 : index
    %c0_10 = arith.constant 0 : index
    %17 = vector.load %arg5[%c0_9, %c0_10] : memref<2x128xf32, #tpu.memory_space<vmem>>, vector<2x128xf32>
    tpu.vector_store %arg5[%c0_9, %c0_10], %16 {strides = array<i32>} : memref<2x128xf32, #tpu.memory_space<vmem>>, vector<2x128xf32>,
    return
  }
  func.func @transform_0(%arg0: i32) -> (i32, i32) {
    %c0_i32 = arith.constant 0 : i32
    %c0_i32_0 = arith.constant 0 : i32
    return %arg0, %c0_i32 : i32, i32
  }
  func.func @transform_1(%arg0: i32) -> (i32, i32) {
    %c0_i32 = arith.constant 0 : i32
    %c0_i32_0 = arith.constant 0 : i32
    %c0_i32_1 = arith.constant 0 : i32
    return %c0_i32, %c0_i32_0 : i32, i32
  }
  func.func @transform_2(%arg0: i32) -> (i32, i32) {
    %c0_i32 = arith.constant 0 : i32
    %c0_i32_0 = arith.constant 0 : i32
    %c0_i32_1 = arith.constant 0 : i32
    return %c0_i32, %c0_i32_0 : i32, i32
  }
  func.func @transform_3(%arg0: i32) -> (i32, i32) {
    %c0_i32 = arith.constant 0 : i32
    %c0_i32_0 = arith.constant 0 : i32
    return %arg0, %c0_i32 : i32, i32
  }
  func.func @transform_4(%arg0: i32) -> (i32, i32) {
    %c0_i32 = arith.constant 0 : i32
    %c0_i32_0 = arith.constant 0 : i32
    return %arg0, %c0_i32 : i32, i32
  }
}

</mosaic_0001>

<bundles_post_ra>
// kernel: tpu_custom_call.1
= control target key start
LH: loop header
LB: loop body
LE: loop exit
PB: predicated region body
PF: predicated region fallthrough
CT: control target
= control target key end

     0   :  { %10 = vsyncpa [#allocation3], 0  ;;  %s4088_s0 = inlined_call_operand.hbm [shape: f32[2,4096], index: 0, kind: input, shape index: {}]   ;;  %s4089_s1 = inlined_call_operand.hbm [shape: bf16[4096,128], index: 1, kind: input, shape index: {}]   ;;  %s4090_s2 = inlined_call_operand.vmem [shape: f32[1,128], index: 2, kind: input, shape index: {}]   ;;  %s4091_s3 = inlined_call_operand.hbm [shape: f32[2,128], index: 3, kind: output, shape index: {0}]   ;;  %s4092_s4 = inlined_call_operand.hbm [shape: f32[2,128], index: 4, kind: output, shape index: {1}]  }
   0x1   :  { %11 = vsyncpa [#allocation6], 0 }
   0x2   :  { %12 = vsyncpa [#allocation4], 0 }
   0x3   :  { %13 = vsyncpa [#allocation9], 0  ;;  %s3980_s15 = smov [#allocation2]   ;;  %s3981_s17 = smov [#allocation5]  }
   0x4   :  { %s20_s16 = sshll.u32 %s3980_s15, 4  ;;  %s29_s18 = sshll.u32 %s3981_s17, 4  ;;  %s21_s16 = int_to_ptr.vmem [resolvable:$true] %s20_s16  ;;  %s4012_s18 = int_to_ptr.vmem [resolvable:$true] %s29_s18 }
   0x5   :  { %s3884_s21 = scalar_lea.hbm %s4088_s0, 1024 }
   0x6   :  { %p3885_p0 = scmp.ne.s32.totalorder %s4088_s0, %s3884_s21  ;;  %p3888_p1 = scmp.lt.u32.totalorder %s3884_s21, %s4088_s0 }
   0x8   :  { %p3890_p2 = pnand %p3888_p1, %p3885_p0 }
   0xa   :  { %3893 = shalt.err (!%p3890_p2)
}
   0xb   :  { %s3894_s26 = scalar_lea.vmem %s21_s16, 1024  ;;  %p3899_p4 = scmp.lt.s32.totalorder %s21_s16, %s21_s16 }
   0xc   :  { %p3895_p3 = scmp.ne.s32.totalorder %s21_s16, %s3894_s26  ;;  %p3900_p5 = scmp.lt.s32.totalorder %s3894_s26, %s3894_s26 }
   0xe   :  { %p3901_p6 = por %p3900_p5, %p3899_p4 }
  0x10   :  { %p3902_p7 = pnand %p3901_p6, %p3895_p3 }
  0x12   :  { %3905 = shalt.err (!%p3902_p7)
}
  0x13   :  { %23 = dma.hbm_to_vmem [thread:$0]  %s4088_s0, 1024, %s21_s16, [#allocation3]  }
  0x14   :  { %s3906_s5 = scalar_lea.hbm %s4089_s1, 32768 }
  0x15   :  { %p3907_p8 = scmp.ne.s32.totalorder %s4089_s1, %s3906_s5  ;;  %p3910_p9 = scmp.lt.u32.totalorder %s3906_s5, %s4089_s1 }
  0x17   :  { %p3912_p10 = pnand %p3910_p9, %p3907_p8 }
  0x19   :  { %3915 = shalt.err (!%p3912_p10)
}
  0x1a   :  { %s3916_s10 = scalar_lea.vmem %s4012_s18, 32768  ;;  %p3921_p12 = scmp.lt.s32.totalorder %s4012_s18, %s4012_s18 }
  0x1b   :  { %p3917_p11 = scmp.ne.s32.totalorder %s4012_s18, %s3916_s10  ;;  %p3922_p13 = scmp.lt.s32.totalorder %s3916_s10, %s3916_s10 }
  0x1d   :  { %p3923_p0 = por %p3922_p13, %p3921_p12 }
  0x1f   :  { %p3924_p1 = pnand %p3923_p0, %p3917_p11 }
  0x21   :  { %3927 = shalt.err (!%p3924_p1)
}
  0x22   :  { %s3982_s0 = smov 64   ;;  %s3983_s11 = smov 4  }
  0x23   :  { %35 = dma.hbm_to_vmem [thread:$0]  %s4089_s1, 32768, %s4012_s18, [#allocation6], %s3982_s0, %s3982_s0, %s3983_s11  }
  0x24   :  { %3972 = dma.done.wait [#allocation3], 1024  }
  0x25   :  { %3973 = vsyncadd [#allocation3], 4294966272 }
  0x26   :  { %3974 = dma.done.wait [#allocation6], 32768  }
  0x27   :  { %3975 = vsyncadd [#allocation6], 4294934528  ;;  %v3616_v0 = vld [vmem:[#allocation5 + $0x40] sm:$0xff]   ;;  %v3620_v4 = vld [vmem:[#allocation5 + $0x48] sm:$0xff]   ;;  %v3984_v22 = vmov 1983009808   ;;  %v65_v24 = vlaneseq }
  0x28   :  { %v3617_v1 = vld [vmem:[#allocation5 + $0xc0] sm:$0xff]   ;;  %3257 = vmatprep.subr.bf16.mxu0 %v3616_v0  ;;  %v3621_v5 = vld [vmem:[#allocation5 + $0xc8] sm:$0xff]   ;;  %v3624_v8 = vld [vmem:[#allocation5 + $0x50] sm:$0xff]   ;;  %v63_v23 = vunpack.c.l.s4 %v3984_v22  ;;  %vm2957_vm0 = vcmask 1041408  }
  0x29   :  { %v3618_v2 = vld [vmem:[#allocation5] sm:$0xff]   ;;  %3279 = vmatprep.subr.bf16.mxu1 %v3617_v1  ;;  %v3622_v6 = vld [vmem:[#allocation5 + $0x8] sm:$0xff]   ;;  %v3625_v9 = vld [vmem:[#allocation5 + $0xd0] sm:$0xff]   ;;  %v66_v30 = vshrl.u32 %v65_v24, 7 }
  0x2a   :  { %v3619_v3 = vld [vmem:[#allocation5 + $0x80] sm:$0xff]   ;;  %3258 = vmatpush3.bf16.msra.mxu0 %v3618_v2  ;;  %v3623_v7 = vld [vmem:[#allocation5 + $0x88] sm:$0xff]   ;;  %v3626_v10 = vld [vmem:[#allocation5 + $0x10] sm:$0xff]   ;;  %v64_v29 = vunpack.c.0.s8 %v63_v23 }
  0x2b   :  { %3280 = vmatpush3.bf16.msra.mxu1 %v3619_v3  ;;  %3259 = vmatprep.subr.bf16.mxu0 %v3620_v4  ;;  %v3627_v11 = vld [vmem:[#allocation5 + $0x90] sm:$0xff]   ;;  %v3628_v12 = vld [vmem:[#allocation5 + $0x58] sm:$0xff]   ;;  %v3632_v16 = vld [vmem:[#allocation5 + $0x60] sm:$0xff]  }
  0x2c   :  { %3281 = vmatprep.subr.bf16.mxu1 %v3621_v5  ;;  %v3629_v13 = vld [vmem:[#allocation5 + $0xd8] sm:$0xff]   ;;  %v3633_v17 = vld [vmem:[#allocation5 + $0xe0] sm:$0xff]   ;;  %v3636_v20 = vld [vmem:[#allocation5 + $0x68] sm:$0xff]   ;;  %v4043_v35 = vsub.s32 %v64_v29, %v66_v30 }
  0x2d   :  { %v3630_v14 = vld [vmem:[#allocation5 + $0x18] sm:$0xff]   ;;  %v3634_v18 = vld [vmem:[#allocation5 + $0x20] sm:$0xff]   ;;  %v3637_v21 = vld [vmem:[#allocation5 + $0xe8] sm:$0xff]  }
  0x2e   :  { %3260 = vmatpush3.bf16.msra.mxu0 %v3622_v6  ;;  %v3631_v15 = vld [vmem:[#allocation5 + $0x98] sm:$0xff]   ;;  %v3635_v19 = vld [vmem:[#allocation5 + $0xa0] sm:$0xff]   ;;  %v3638_v25 = vld [vmem:[#allocation5 + $0x28] sm:$0xff]  }
  0x2f   :  { %3282 = vmatpush3.bf16.msra.mxu1 %v3623_v7  ;;  %3261 = vmatprep.subr.bf16.mxu0 %v3624_v8  ;;  %v3639_v26 = vld [vmem:[#allocation5 + $0xa8] sm:$0xff]   ;;  %v3640_v27 = vld [vmem:[#allocation5 + $0x70] sm:$0xff]   ;;  %v3644_v33 = vld [vmem:[#allocation5 + $0x78] sm:$0xff]  }
  0x30   :  { %3283 = vmatprep.subr.bf16.mxu1 %v3625_v9  ;;  %v3641_v28 = vld [vmem:[#allocation5 + $0xf0] sm:$0xff]   ;;  %v3645_v34 = vld [vmem:[#allocation5 + $0xf8] sm:$0xff]   ;;  %v45_v38 = vld [vmem:[#allocation2] sm:$0xff] }
  0x31   :  { %v3642_v31 = vld [vmem:[#allocation5 + $0x30] sm:$0xff]   ;;  %v3646_v36 = vld [vmem:[#allocation5 + $0x38] sm:$0xff]   ;;  %v68_v39 = vrot.slane %v45_v38, %v4043_v35  ;;  %v61_v40 = vcombine.high %v45_v38, %v45_v38  ;;  %v3649_v41 = vld [vmem:[#allocation5 + $0x140] sm:$0xff]  }
  0x32   :  { %3262 = vmatpush3.bf16.msra.mxu0 %v3626_v10  ;;  %v3643_v32 = vld [vmem:[#allocation5 + $0xb0] sm:$0xff]   ;;  %v3647_v37 = vld [vmem:[#allocation5 + $0xb8] sm:$0xff]   ;;  %v3650_v42 = vld [vmem:[#allocation5 + $0x1c0] sm:$0xff]  }
  0x33   :  { %3284 = vmatpush3.bf16.msra.mxu1 %v3627_v11  ;;  %3263 = vmatprep.subr.bf16.mxu0 %v3628_v12  ;;  %v76_v43 = vcombine.high %v68_v39, %v68_v39  ;;  %v75_v44 = vrot.slane %v61_v40, %v4043_v35  ;;  %v229_v45 = vpack.c.bf16 %v68_v39, %v68_v39  ;;  %v3651_v46 = vld [vmem:[#allocation5 + $0x100] sm:$0xff]   ;;  %v3653_v51 = vld [vmem:[#allocation5 + $0x148] sm:$0xff]   ;;  %v3657_v56 = vld [vmem:[#allocation5 + $0x150] sm:$0xff]  }
  0x34   :  { %3285 = vmatprep.subr.bf16.mxu1 %v3629_v13  ;;  %v3652_v49 = vld [vmem:[#allocation5 + $0x180] sm:$0xff]   ;;  %v3654_v53 = vld [vmem:[#allocation5 + $0x1c8] sm:$0xff]   ;;  %v3658_v57 = vld [vmem:[#allocation5 + $0x1d0] sm:$0xff]  }
  0x35   :  { %v230_v47 = vpack.c.bf16 %v76_v43, %v76_v43  ;;  %v77_v48 = vcombine.high %v75_v44, %v75_v44  ;;  %v231_v50 = vpack.c.bf16 %v75_v44, %v75_v44  ;;  %v3655_v54 = vld [vmem:[#allocation5 + $0x108] sm:$0xff]   ;;  %v3659_v58 = vld [vmem:[#allocation5 + $0x110] sm:$0xff]   ;;  %v3661_v60 = vld [vmem:[#allocation5 + $0x158] sm:$0xff]  }
  0x36   :  { %3264 = vmatpush3.bf16.msra.mxu0 %v3630_v14  ;;  %v3656_v55 = vld [vmem:[#allocation5 + $0x188] sm:$0xff]   ;;  %v3660_v59 = vld [vmem:[#allocation5 + $0x190] sm:$0xff]   ;;  %v3662_v61 = vld [vmem:[#allocation5 + $0x1d8] sm:$0xff]  }
  0x37   :  { %3286 = vmatpush3.bf16.msra.mxu1 %v3631_v15  ;;  %3265 = vmatprep.subr.bf16.mxu0 %v3632_v16  ;;  %v232_v52 = vpack.c.bf16 %v77_v48, %v77_v48  ;;  %v3663_v62 = vld [vmem:[#allocation5 + $0x118] sm:$0xff]   ;;  %v3665_v0 = vld [vmem:[#allocation5 + $0x160] sm:$0xff]   ;;  %v3669_v4 = vld [vmem:[#allocation5 + $0x168] sm:$0xff]  }
  0x38   :  { %3287 = vmatprep.subr.bf16.mxu1 %v3633_v17  ;;  %2348 = vmatprep.mubr.bf16.mxu0 %v230_v47  ;;  %v3664_v63 = vld [vmem:[#allocation5 + $0x198] sm:$0xff]   ;;  %v3666_v1 = vld [vmem:[#allocation5 + $0x1e0] sm:$0xff]   ;;  %v3670_v5 = vld [vmem:[#allocation5 + $0x1e8] sm:$0xff]  }
  0x39   :  { %2388 = vmatprep.mubr.bf16.mxu1 %v232_v52  ;;  %v3667_v2 = vld [vmem:[#allocation5 + $0x120] sm:$0xff]   ;;  %v3671_v6 = vld [vmem:[#allocation5 + $0x128] sm:$0xff]   ;;  %v3673_v8 = vld [vmem:[#allocation5 + $0x170] sm:$0xff]  }
  0x3a   :  { %3266 = vmatpush3.bf16.msra.mxu0 %v3634_v18  ;;  %v3668_v3 = vld [vmem:[#allocation5 + $0x1a0] sm:$0xff]   ;;  %v3672_v7 = vld [vmem:[#allocation5 + $0x1a8] sm:$0xff]   ;;  %v3674_v9 = vld [vmem:[#allocation5 + $0x1f0] sm:$0xff]  }
  0x3b   :  { %3288 = vmatpush3.bf16.msra.mxu1 %v3635_v19  ;;  %3267 = vmatprep.subr.bf16.mxu0 %v3636_v20  ;;  %v3675_v10 = vld [vmem:[#allocation5 + $0x130] sm:$0xff]   ;;  %v3677_v12 = vld [vmem:[#allocation5 + $0x178] sm:$0xff]   ;;  %v46_v15 = vld [vmem:[#allocation2 + $0x8] sm:$0xff] }
  0x3c   :  { %3289 = vmatprep.subr.bf16.mxu1 %v3637_v21  ;;  %v3676_v11 = vld [vmem:[#allocation5 + $0x1b0] sm:$0xff]   ;;  %v3678_v13 = vld [vmem:[#allocation5 + $0x1f8] sm:$0xff]   ;;  %v85_v17 = vrot.slane %v46_v15, %v4043_v35  ;;  %v78_v18 = vcombine.high %v46_v15, %v46_v15  ;;  %v3682_v19 = vld [vmem:[#allocation5 + $0x240] sm:$0xff]  }
  0x3d   :  { %v3679_v14 = vld [vmem:[#allocation5 + $0x138] sm:$0xff]   ;;  %v3683_v22 = vld [vmem:[#allocation5 + $0x2c0] sm:$0xff]   ;;  %v3686_v29 = vld [vmem:[#allocation5 + $0x248] sm:$0xff]  }
  0x3e   :  { %3268 = vmatpush3.bf16.msra.mxu0 %v3638_v25  ;;  %v3680_v16 = vld [vmem:[#allocation5 + $0x1b8] sm:$0xff]   ;;  %v93_v20 = vcombine.high %v85_v17, %v85_v17  ;;  %v92_v21 = vrot.slane %v78_v18, %v4043_v35  ;;  %v233_v23 = vpack.c.bf16 %v85_v17, %v85_v17  ;;  %v3684_v24 = vld [vmem:[#allocation5 + $0x200] sm:$0xff]   ;;  %v3693_v38 = vld [vmem:[#allocation5 + $0x290] sm:$0xff]  }
  0x3f   :  { %3290 = vmatpush3.bf16.msra.mxu1 %v3639_v26  ;;  %3269 = vmatprep.subr.bf16.mxu0 %v3640_v27  ;;  %v3685_v27 = vld [vmem:[#allocation5 + $0x280] sm:$0xff]   ;;  %v3694_v39 = vld [vmem:[#allocation5 + $0x258] sm:$0xff]   ;;  %v3702_v47 = vld [vmem:[#allocation5 + $0x268] sm:$0xff]  }
  0x40   :  { %3291 = vmatprep.subr.bf16.mxu1 %v3641_v28  ;;  %v234_v25 = vpack.c.bf16 %v93_v20, %v93_v20  ;;  %v94_v26 = vcombine.high %v92_v21, %v92_v21  ;;  %v235_v28 = vpack.c.bf16 %v92_v21, %v92_v21  ;;  %v3695_v40 = vld [vmem:[#allocation5 + $0x2d8] sm:$0xff]   ;;  %v3698_v43 = vld [vmem:[#allocation5 + $0x260] sm:$0xff]   ;;  %v3703_v48 = vld [vmem:[#allocation5 + $0x2e8] sm:$0xff]  }
  0x41   :  { %v3699_v44 = vld [vmem:[#allocation5 + $0x2e0] sm:$0xff]   ;;  %v3707_v52 = vld [vmem:[#allocation5 + $0x2f0] sm:$0xff]   ;;  %v3727_v17 = vld [vmem:[#allocation5 + $0x358] sm:$0xff]  }
  0x42   :  { %3270 = vmatpush3.bf16.msra.mxu0 %v3642_v31  ;;  %v236_v30 = vpack.c.bf16 %v94_v26, %v94_v26  ;;  %v3687_v31 = vld [vmem:[#allocation5 + $0x2c8] sm:$0xff]   ;;  %v3725_v15 = vld [vmem:[#allocation5 + $0x310] sm:$0xff]   ;;  %v3728_v18 = vld [vmem:[#allocation5 + $0x3d8] sm:$0xff]  }
  0x43   :  { %3292 = vmatpush3.bf16.msra.mxu1 %v3643_v32  ;;  %3271 = vmatprep.subr.bf16.mxu0 %v3644_v33  ;;  %v3688_v32 = vld [vmem:[#allocation5 + $0x208] sm:$0xff]   ;;  %v3730_v20 = vld [vmem:[#allocation5 + $0x398] sm:$0xff]   ;;  %v3731_v21 = vld [vmem:[#allocation5 + $0x360] sm:$0xff]  }
  0x44   :  { %3293 = vmatprep.subr.bf16.mxu1 %v3645_v34  ;;  %v3689_v33 = vld [vmem:[#allocation5 + $0x288] sm:$0xff]   ;;  %v3690_v34 = vld [vmem:[#allocation5 + $0x250] sm:$0xff]  }
  0x45   :  { %v3736_v26 = vld [vmem:[#allocation5 + $0x3e8] sm:$0xff]  }
  0x46   :  { %3272 = vmatpush3.bf16.msra.mxu0 %v3646_v36  ;;  %v3691_v36 = vld [vmem:[#allocation5 + $0x2d0] sm:$0xff]  }
  0x47   :  { %3294 = vmatpush3.bf16.msra.mxu1 %v3647_v37  ;;  %3301 = vmatprep.subr.bf16.mxu0 %v3649_v41  ;;  %v3692_v37 = vld [vmem:[#allocation5 + $0x210] sm:$0xff]   ;;  %v3696_v41 = vld [vmem:[#allocation5 + $0x218] sm:$0xff]  }
  0x48   :  { %3323 = vmatprep.subr.bf16.mxu1 %v3650_v42  ;;  %v3697_v42 = vld [vmem:[#allocation5 + $0x298] sm:$0xff]  }
  0x49   :  { %2349 = vmatmul.mubr.bf16.vlgmr.msra.gmra.mrb[0].mxu0 %v229_v45  ;;  %v3700_v45 = vld [vmem:[#allocation5 + $0x220] sm:$0xff]  }
  0x4a   :  { %3302 = vmatpush3.bf16.msra.mxu0 %v3651_v46  ;;  %2389 = vmatmul.mubr.bf16.vlgmr.msra.gmra.mrb[0].mxu1 %v231_v50  ;;  %v3701_v46 = vld [vmem:[#allocation5 + $0x2a0] sm:$0xff]   ;;  %v3705_v50 = vld [vmem:[#allocation5 + $0x2a8] sm:$0xff]  }
  0x4b   :  { %3303 = vmatprep.subr.bf16.mxu0 %v3653_v51  ;;  %3324 = vmatpush3.bf16.msra.mxu1 %v3652_v49  ;;  %v3704_v49 = vld [vmem:[#allocation5 + $0x228] sm:$0xff]   ;;  %v3706_v51 = vld [vmem:[#allocation5 + $0x270] sm:$0xff]  }
  0x4c   :  { %3325 = vmatprep.subr.bf16.mxu1 %v3654_v53  ;;  %2428 = vmatprep.mubr.bf16.mxu0 %v234_v25  ;;  %v3708_v53 = vld [vmem:[#allocation5 + $0x230] sm:$0xff]   ;;  %v3735_v25 = vld [vmem:[#allocation5 + $0x368] sm:$0xff]  }
  0x4d   :  { %2468 = vmatprep.mubr.bf16.mxu1 %v236_v30  ;;  %v3740_v30 = vld [vmem:[#allocation5 + $0x3f0] sm:$0xff]  }
  0x4e   :  { %3304 = vmatpush3.bf16.msra.mxu0 %v3655_v54  ;;  %v3709_v54 = vld [vmem:[#allocation5 + $0x2b0] sm:$0xff]  }
  0x4f   :  { %3305 = vmatprep.subr.bf16.mxu0 %v3657_v56  ;;  %3326 = vmatpush3.bf16.msra.mxu1 %v3656_v55  ;;  %v3710_v55 = vld [vmem:[#allocation5 + $0x278] sm:$0xff]  }
  0x50   :  { %3327 = vmatprep.subr.bf16.mxu1 %v3658_v57  ;;  %v3711_v56 = vld [vmem:[#allocation5 + $0x2f8] sm:$0xff]  }
  0x51   :  { %v3712_v57 = vld [vmem:[#allocation5 + $0x238] sm:$0xff]  }
  0x52   :  { %3306 = vmatpush3.bf16.msra.mxu0 %v3659_v58  ;;  %v47_v58 = vld [vmem:[#allocation2 + $0x10] sm:$0xff] }
  0x53   :  { %3307 = vmatprep.subr.bf16.mxu0 %v3661_v60  ;;  %3328 = vmatpush3.bf16.msra.mxu1 %v3660_v59  ;;  %v3713_v59 = vld [vmem:[#allocation5 + $0x2b8] sm:$0xff]   ;;  %v102_v60 = vrot.slane %v47_v58, %v4043_v35 }
  0x54   :  { %3329 = vmatprep.subr.bf16.mxu1 %v3662_v61  ;;  %v95_v61 = vcombine.high %v47_v58, %v47_v58  ;;  %v3758_v58 = vld [vmem:[#allocation5 + $0x410] sm:$0xff]  }
  0x56   :  { %3308 = vmatpush3.bf16.msra.mxu0 %v3663_v62  ;;  %v3715_v62 = vld [vmem:[#allocation5 + $0x340] sm:$0xff]  }
  0x57   :  { %3309 = vmatprep.subr.bf16.mxu0 %v3665_v0  ;;  %3330 = vmatpush3.bf16.msra.mxu1 %v3664_v63  ;;  %v110_v63 = vcombine.high %v102_v60, %v102_v60  ;;  %v109_v0 = vrot.slane %v95_v61, %v4043_v35  ;;  %v3761_v61 = vld [vmem:[#allocation5 + $0x4d8] sm:$0xff]  }
  0x58   :  { %3331 = vmatprep.subr.bf16.mxu1 %v3666_v1  ;;  %v3716_v1 = vld [vmem:[#allocation5 + $0x3c0] sm:$0xff]  }
  0x5a   :  { %3310 = vmatpush3.bf16.msra.mxu0 %v3667_v2  ;;  %v237_v2 = vpack.c.bf16 %v102_v60, %v102_v60  ;;  %v3760_v60 = vld [vmem:[#allocation5 + $0x458] sm:$0xff]  }
  0x5b   :  { %3311 = vmatprep.subr.bf16.mxu0 %v3669_v4  ;;  %3332 = vmatpush3.bf16.msra.mxu1 %v3668_v3  ;;  %v3717_v3 = vld [vmem:[#allocation5 + $0x300] sm:$0xff]   ;;  %v238_v4 = vpack.c.bf16 %v110_v63, %v110_v63  ;;  %v3763_v63 = vld [vmem:[#allocation5 + $0x498] sm:$0xff]  }
  0x5c   :  { %3333 = vmatprep.subr.bf16.mxu1 %v3670_v5  ;;  %v111_v5 = vcombine.high %v109_v0, %v109_v0 }
  0x5e   :  { %3312 = vmatpush3.bf16.msra.mxu0 %v3671_v6  ;;  %v3718_v6 = vld [vmem:[#allocation5 + $0x380] sm:$0xff]  }
  0x5f   :  { %3313 = vmatprep.subr.bf16.mxu0 %v3673_v8  ;;  %3334 = vmatpush3.bf16.msra.mxu1 %v3672_v7  ;;  %v239_v7 = vpack.c.bf16 %v109_v0, %v109_v0  ;;  %v3719_v8 = vld [vmem:[#allocation5 + $0x348] sm:$0xff]   ;;  %v3764_v0 = vld [vmem:[#allocation5 + $0x460] sm:$0xff]  }
  0x60   :  { %3335 = vmatprep.subr.bf16.mxu1 %v3674_v9  ;;  %v240_v9 = vpack.c.bf16 %v111_v5, %v111_v5  ;;  %v3769_v5 = vld [vmem:[#allocation5 + $0x4e8] sm:$0xff]  }
  0x62   :  { %3314 = vmatpush3.bf16.msra.mxu0 %v3675_v10  ;;  %v3720_v10 = vld [vmem:[#allocation5 + $0x3c8] sm:$0xff]  }
  0x63   :  { %3315 = vmatprep.subr.bf16.mxu0 %v3677_v12  ;;  %3336 = vmatpush3.bf16.msra.mxu1 %v3676_v11  ;;  %v3721_v11 = vld [vmem:[#allocation5 + $0x308] sm:$0xff]  }
  0x64   :  { %3337 = vmatprep.subr.bf16.mxu1 %v3678_v13  ;;  %v3722_v12 = vld [vmem:[#allocation5 + $0x388] sm:$0xff]   ;;  %v3723_v13 = vld [vmem:[#allocation5 + $0x350] sm:$0xff]  }
  0x66   :  { %3316 = vmatpush3.bf16.msra.mxu0 %v3679_v14  ;;  %v3724_v14 = vld [vmem:[#allocation5 + $0x3d0] sm:$0xff]  }
  0x67   :  { %3345 = vmatprep.subr.bf16.mxu0 %v3682_v19  ;;  %3338 = vmatpush3.bf16.msra.mxu1 %v3680_v16  ;;  %v3726_v16 = vld [vmem:[#allocation5 + $0x390] sm:$0xff]   ;;  %v3729_v19 = vld [vmem:[#allocation5 + $0x318] sm:$0xff]  }
  0x68   :  { %3367 = vmatprep.subr.bf16.mxu1 %v3683_v22  ;;  %v3732_v22 = vld [vmem:[#allocation5 + $0x3e0] sm:$0xff]  }
  0x69   :  { %2429 = vmatmul.mubr.bf16.vlgmr.msra.gmra.mrb[4].mxu0 %v233_v23  ;;  %v3733_v23 = vld [vmem:[#allocation5 + $0x320] sm:$0xff]  }
  0x6a   :  { %3346 = vmatpush3.bf16.msra.mxu0 %v3684_v24  ;;  %2469 = vmatmul.mubr.bf16.vlgmr.msra.gmra.mrb[4].mxu1 %v235_v28  ;;  %v3734_v24 = vld [vmem:[#allocation5 + $0x3a0] sm:$0xff]   ;;  %v3738_v28 = vld [vmem:[#allocation5 + $0x3a8] sm:$0xff]  }
  0x6b   :  { %3347 = vmatprep.subr.bf16.mxu0 %v3686_v29  ;;  %3368 = vmatpush3.bf16.msra.mxu1 %v3685_v27  ;;  %v3737_v27 = vld [vmem:[#allocation5 + $0x328] sm:$0xff]   ;;  %v3739_v29 = vld [vmem:[#allocation5 + $0x370] sm:$0xff]  }
  0x6c   :  { %3369 = vmatprep.subr.bf16.mxu1 %v3687_v31  ;;  %2508 = vmatprep.mubr.bf16.mxu0 %v238_v4  ;;  %v3741_v31 = vld [vmem:[#allocation5 + $0x330] sm:$0xff]   ;;  %v3768_v4 = vld [vmem:[#allocation5 + $0x468] sm:$0xff]  }
  0x6d   :  { %2548 = vmatprep.mubr.bf16.mxu1 %v240_v9  ;;  %v3773_v9 = vld [vmem:[#allocation5 + $0x4f0] sm:$0xff]  }
  0x6e   :  { %3348 = vmatpush3.bf16.msra.mxu0 %v3688_v32  ;;  %v3742_v32 = vld [vmem:[#allocation5 + $0x3b0] sm:$0xff]  }
  0x6f   :  { %3349 = vmatprep.subr.bf16.mxu0 %v3690_v34  ;;  %3370 = vmatpush3.bf16.msra.mxu1 %v3689_v33  ;;  %v3743_v33 = vld [vmem:[#allocation5 + $0x378] sm:$0xff]  }
  0x70   :  { %3371 = vmatprep.subr.bf16.mxu1 %v3691_v36  ;;  %v3744_v34 = vld [vmem:[#allocation5 + $0x3f8] sm:$0xff]  }
  0x71   :  { %v3745_v36 = vld [vmem:[#allocation5 + $0x338] sm:$0xff]  }
  0x72   :  { %3350 = vmatpush3.bf16.msra.mxu0 %v3692_v37  ;;  %v48_v37 = vld [vmem:[#allocation2 + $0x18] sm:$0xff] }
  0x73   :  { %3351 = vmatprep.subr.bf16.mxu0 %v3694_v39  ;;  %3372 = vmatpush3.bf16.msra.mxu1 %v3693_v38  ;;  %v119_v38 = vrot.slane %v48_v37, %v4043_v35  ;;  %v112_v39 = vcombine.high %v48_v37, %v48_v37  ;;  %v3791_v37 = vld [vmem:[#allocation5 + $0x510] sm:$0xff]  }
  0x74   :  { %3373 = vmatprep.subr.bf16.mxu1 %v3695_v40  ;;  %v3748_v40 = vld [vmem:[#allocation5 + $0x440] sm:$0xff]  }
  0x76   :  { %3352 = vmatpush3.bf16.msra.mxu0 %v3696_v41  ;;  %v3746_v41 = vld [vmem:[#allocation5 + $0x3b8] sm:$0xff]  }
  0x77   :  { %3353 = vmatprep.subr.bf16.mxu0 %v3698_v43  ;;  %3374 = vmatpush3.bf16.msra.mxu1 %v3697_v42  ;;  %v127_v42 = vcombine.high %v119_v38, %v119_v38  ;;  %v126_v43 = vrot.slane %v112_v39, %v4043_v35  ;;  %v3793_v39 = vld [vmem:[#allocation5 + $0x558] sm:$0xff]  }
  0x78   :  { %3375 = vmatprep.subr.bf16.mxu1 %v3699_v44  ;;  %v3749_v44 = vld [vmem:[#allocation5 + $0x4c0] sm:$0xff]  }
  0x7a   :  { %3354 = vmatpush3.bf16.msra.mxu0 %v3700_v45  ;;  %v241_v45 = vpack.c.bf16 %v119_v38, %v119_v38  ;;  %v3792_v38 = vld [vmem:[#allocation5 + $0x590] sm:$0xff]  }
  0x7b   :  { %3355 = vmatprep.subr.bf16.mxu0 %v3702_v47  ;;  %3376 = vmatpush3.bf16.msra.mxu1 %v3701_v46  ;;  %v3750_v46 = vld [vmem:[#allocation5 + $0x400] sm:$0xff]   ;;  %v242_v47 = vpack.c.bf16 %v127_v42, %v127_v42  ;;  %v3796_v42 = vld [vmem:[#allocation5 + $0x598] sm:$0xff]  }
  0x7c   :  { %3377 = vmatprep.subr.bf16.mxu1 %v3703_v48  ;;  %v128_v48 = vcombine.high %v126_v43, %v126_v43 }
  0x7e   :  { %3356 = vmatpush3.bf16.msra.mxu0 %v3704_v49  ;;  %v3751_v49 = vld [vmem:[#allocation5 + $0x480] sm:$0xff]  }
  0x7f   :  { %3357 = vmatprep.subr.bf16.mxu0 %v3706_v51  ;;  %3378 = vmatpush3.bf16.msra.mxu1 %v3705_v50  ;;  %v243_v50 = vpack.c.bf16 %v126_v43, %v126_v43  ;;  %v3752_v51 = vld [vmem:[#allocation5 + $0x448] sm:$0xff]   ;;  %v3797_v43 = vld [vmem:[#allocation5 + $0x560] sm:$0xff]  }
  0x80   :  { %3379 = vmatprep.subr.bf16.mxu1 %v3707_v52  ;;  %v244_v52 = vpack.c.bf16 %v128_v48, %v128_v48  ;;  %v3802_v48 = vld [vmem:[#allocation5 + $0x5e8] sm:$0xff]  }
  0x82   :  { %3358 = vmatpush3.bf16.msra.mxu0 %v3708_v53  ;;  %v3753_v53 = vld [vmem:[#allocation5 + $0x4c8] sm:$0xff]  }
  0x83   :  { %3359 = vmatprep.subr.bf16.mxu0 %v3710_v55  ;;  %3380 = vmatpush3.bf16.msra.mxu1 %v3709_v54  ;;  %v3754_v54 = vld [vmem:[#allocation5 + $0x408] sm:$0xff]  }
  0x84   :  { %3381 = vmatprep.subr.bf16.mxu1 %v3711_v56  ;;  %v3755_v55 = vld [vmem:[#allocation5 + $0x488] sm:$0xff]   ;;  %v3756_v56 = vld [vmem:[#allocation5 + $0x450] sm:$0xff]  }
  0x86   :  { %3360 = vmatpush3.bf16.msra.mxu0 %v3712_v57  ;;  %v3757_v57 = vld [vmem:[#allocation5 + $0x4d0] sm:$0xff]  }
  0x87   :  { %3389 = vmatprep.subr.bf16.mxu0 %v3715_v62  ;;  %3382 = vmatpush3.bf16.msra.mxu1 %v3713_v59  ;;  %v3759_v59 = vld [vmem:[#allocation5 + $0x490] sm:$0xff]   ;;  %v3762_v62 = vld [vmem:[#allocation5 + $0x418] sm:$0xff]  }
  0x88   :  { %3411 = vmatprep.subr.bf16.mxu1 %v3716_v1  ;;  %v3765_v1 = vld [vmem:[#allocation5 + $0x4e0] sm:$0xff]  }
  0x89   :  { %2509 = vmatmul.mubr.bf16.vlgmr.msra.gmra.mrb[8].mxu0 %v237_v2  ;;  %v3766_v2 = vld [vmem:[#allocation5 + $0x420] sm:$0xff]  }
  0x8a   :  { %3390 = vmatpush3.bf16.msra.mxu0 %v3717_v3  ;;  %2549 = vmatmul.mubr.bf16.vlgmr.msra.gmra.mrb[8].mxu1 %v239_v7  ;;  %v3767_v3 = vld [vmem:[#allocation5 + $0x4a0] sm:$0xff]   ;;  %v3771_v7 = vld [vmem:[#allocation5 + $0x4a8] sm:$0xff]  }
  0x8b   :  { %3391 = vmatprep.subr.bf16.mxu0 %v3719_v8  ;;  %3412 = vmatpush3.bf16.msra.mxu1 %v3718_v6  ;;  %v3770_v6 = vld [vmem:[#allocation5 + $0x428] sm:$0xff]   ;;  %v3772_v8 = vld [vmem:[#allocation5 + $0x470] sm:$0xff]  }
  0x8c   :  { %3413 = vmatprep.subr.bf16.mxu1 %v3720_v10  ;;  %2588 = vmatprep.mubr.bf16.mxu0 %v242_v47  ;;  %v3774_v10 = vld [vmem:[#allocation5 + $0x430] sm:$0xff]   ;;  %v3801_v47 = vld [vmem:[#allocation5 + $0x568] sm:$0xff]  }
  0x8d   :  { %2628 = vmatprep.mubr.bf16.mxu1 %v244_v52  ;;  %v3806_v52 = vld [vmem:[#allocation5 + $0x5f0] sm:$0xff]  }
  0x8e   :  { %3392 = vmatpush3.bf16.msra.mxu0 %v3721_v11  ;;  %v3775_v11 = vld [vmem:[#allocation5 + $0x4b0] sm:$0xff]  }
  0x8f   :  { %3393 = vmatprep.subr.bf16.mxu0 %v3723_v13  ;;  %3414 = vmatpush3.bf16.msra.mxu1 %v3722_v12  ;;  %v3776_v12 = vld [vmem:[#allocation5 + $0x478] sm:$0xff]  }
  0x90   :  { %3415 = vmatprep.subr.bf16.mxu1 %v3724_v14  ;;  %v3777_v13 = vld [vmem:[#allocation5 + $0x4f8] sm:$0xff]  }
  0x91   :  { %v3778_v14 = vld [vmem:[#allocation5 + $0x438] sm:$0xff]  }
  0x92   :  { %3394 = vmatpush3.bf16.msra.mxu0 %v3725_v15  ;;  %v49_v15 = vld [vmem:[#allocation2 + $0x20] sm:$0xff] }
  0x93   :  { %3395 = vmatprep.subr.bf16.mxu0 %v3727_v17  ;;  %3416 = vmatpush3.bf16.msra.mxu1 %v3726_v16  ;;  %v3779_v16 = vld [vmem:[#allocation5 + $0x4b8] sm:$0xff]   ;;  %v136_v17 = vrot.slane %v49_v15, %v4043_v35 }
  0x94   :  { %3417 = vmatprep.subr.bf16.mxu1 %v3728_v18  ;;  %v129_v18 = vcombine.high %v49_v15, %v49_v15  ;;  %v3824_v15 = vld [vmem:[#allocation5 + $0x610] sm:$0xff]  }
  0x96   :  { %3396 = vmatpush3.bf16.msra.mxu0 %v3729_v19  ;;  %v3781_v19 = vld [vmem:[#allocation5 + $0x540] sm:$0xff]  }
  0x97   :  { %3397 = vmatprep.subr.bf16.mxu0 %v3731_v21  ;;  %3418 = vmatpush3.bf16.msra.mxu1 %v3730_v20  ;;  %v144_v20 = vcombine.high %v136_v17, %v136_v17  ;;  %v143_v21 = vrot.slane %v129_v18, %v4043_v35  ;;  %v3827_v18 = vld [vmem:[#allocation5 + $0x6d8] sm:$0xff]  }
  0x98   :  { %3419 = vmatprep.subr.bf16.mxu1 %v3732_v22  ;;  %v3782_v22 = vld [vmem:[#allocation5 + $0x5c0] sm:$0xff]  }
  0x9a   :  { %3398 = vmatpush3.bf16.msra.mxu0 %v3733_v23  ;;  %v245_v23 = vpack.c.bf16 %v136_v17, %v136_v17  ;;  %v3826_v17 = vld [vmem:[#allocation5 + $0x658] sm:$0xff]  }
  0x9b   :  { %3399 = vmatprep.subr.bf16.mxu0 %v3735_v25  ;;  %3420 = vmatpush3.bf16.msra.mxu1 %v3734_v24  ;;  %v3783_v24 = vld [vmem:[#allocation5 + $0x500] sm:$0xff]   ;;  %v246_v25 = vpack.c.bf16 %v144_v20, %v144_v20  ;;  %v3829_v20 = vld [vmem:[#allocation5 + $0x698] sm:$0xff]  }
  0x9c   :  { %3421 = vmatprep.subr.bf16.mxu1 %v3736_v26  ;;  %v145_v26 = vcombine.high %v143_v21, %v143_v21 }
  0x9e   :  { %3400 = vmatpush3.bf16.msra.mxu0 %v3737_v27  ;;  %v3784_v27 = vld [vmem:[#allocation5 + $0x580] sm:$0xff]  }
  0x9f   :  { %3401 = vmatprep.subr.bf16.mxu0 %v3739_v29  ;;  %3422 = vmatpush3.bf16.msra.mxu1 %v3738_v28  ;;  %v247_v28 = vpack.c.bf16 %v143_v21, %v143_v21  ;;  %v3785_v29 = vld [vmem:[#allocation5 + $0x548] sm:$0xff]   ;;  %v3830_v21 = vld [vmem:[#allocation5 + $0x660] sm:$0xff]  }
  0xa0   :  { %3423 = vmatprep.subr.bf16.mxu1 %v3740_v30  ;;  %v248_v30 = vpack.c.bf16 %v145_v26, %v145_v26  ;;  %v3835_v26 = vld [vmem:[#allocation5 + $0x6e8] sm:$0xff]  }
  0xa2   :  { %3402 = vmatpush3.bf16.msra.mxu0 %v3741_v31  ;;  %v3786_v31 = vld [vmem:[#allocation5 + $0x5c8] sm:$0xff]  }
  0xa3   :  { %3403 = vmatprep.subr.bf16.mxu0 %v3743_v33  ;;  %3424 = vmatpush3.bf16.msra.mxu1 %v3742_v32  ;;  %v3787_v32 = vld [vmem:[#allocation5 + $0x508] sm:$0xff]  }
  0xa4   :  { %3425 = vmatprep.subr.bf16.mxu1 %v3744_v34  ;;  %v3788_v33 = vld [vmem:[#allocation5 + $0x588] sm:$0xff]   ;;  %v3789_v34 = vld [vmem:[#allocation5 + $0x550] sm:$0xff]  }
  0xa6   :  { %3404 = vmatpush3.bf16.msra.mxu0 %v3745_v36  ;;  %v3790_v36 = vld [vmem:[#allocation5 + $0x5d0] sm:$0xff]  }
  0xa7   :  { %3433 = vmatprep.subr.bf16.mxu0 %v3748_v40  ;;  %3426 = vmatpush3.bf16.msra.mxu1 %v3746_v41  ;;  %v3794_v40 = vld [vmem:[#allocation5 + $0x5d8] sm:$0xff]  }
  0xa8   :  { %3455 = vmatprep.subr.bf16.mxu1 %v3749_v44  ;;  %v3795_v41 = vld [vmem:[#allocation5 + $0x518] sm:$0xff]   ;;  %v3798_v44 = vld [vmem:[#allocation5 + $0x5e0] sm:$0xff]  }
  0xa9   :  { %2589 = vmatmul.mubr.bf16.vlgmr.msra.gmra.mrb[12].mxu0 %v241_v45  ;;  %v3799_v45 = vld [vmem:[#allocation5 + $0x520] sm:$0xff]  }
  0xaa   :  { %3434 = vmatpush3.bf16.msra.mxu0 %v3750_v46  ;;  %2629 = vmatmul.mubr.bf16.vlgmr.msra.gmra.mrb[12].mxu1 %v243_v50  ;;  %v3800_v46 = vld [vmem:[#allocation5 + $0x5a0] sm:$0xff]   ;;  %v3804_v50 = vld [vmem:[#allocation5 + $0x5a8] sm:$0xff]  }
  0xab   :  { %3435 = vmatprep.subr.bf16.mxu0 %v3752_v51  ;;  %3456 = vmatpush3.bf16.msra.mxu1 %v3751_v49  ;;  %v3803_v49 = vld [vmem:[#allocation5 + $0x528] sm:$0xff]   ;;  %v3805_v51 = vld [vmem:[#allocation5 + $0x570] sm:$0xff]  }
  0xac   :  { %3457 = vmatprep.subr.bf16.mxu1 %v3753_v53  ;;  %2668 = vmatprep.mubr.bf16.mxu0 %v246_v25  ;;  %v3807_v53 = vld [vmem:[#allocation5 + $0x530] sm:$0xff]   ;;  %v3834_v25 = vld [vmem:[#allocation5 + $0x668] sm:$0xff]  }
  0xad   :  { %2708 = vmatprep.mubr.bf16.mxu1 %v248_v30  ;;  %v3839_v30 = vld [vmem:[#allocation5 + $0x6f0] sm:$0xff]  }
  0xae   :  { %3436 = vmatpush3.bf16.msra.mxu0 %v3754_v54  ;;  %v3808_v54 = vld [vmem:[#allocation5 + $0x5b0] sm:$0xff]  }
  0xaf   :  { %3437 = vmatprep.subr.bf16.mxu0 %v3756_v56  ;;  %3458 = vmatpush3.bf16.msra.mxu1 %v3755_v55  ;;  %v3809_v55 = vld [vmem:[#allocation5 + $0x578] sm:$0xff]  }
  0xb0   :  { %3459 = vmatprep.subr.bf16.mxu1 %v3757_v57  ;;  %v3810_v56 = vld [vmem:[#allocation5 + $0x5f8] sm:$0xff]  }
  0xb1   :  { %v3811_v57 = vld [vmem:[#allocation5 + $0x538] sm:$0xff]  }
  0xb2   :  { %3438 = vmatpush3.bf16.msra.mxu0 %v3758_v58  ;;  %v50_v58 = vld [vmem:[#allocation2 + $0x28] sm:$0xff] }
  0xb3   :  { %3439 = vmatprep.subr.bf16.mxu0 %v3760_v60  ;;  %3460 = vmatpush3.bf16.msra.mxu1 %v3759_v59  ;;  %v3812_v59 = vld [vmem:[#allocation5 + $0x5b8] sm:$0xff]   ;;  %v153_v60 = vrot.slane %v50_v58, %v4043_v35 }
  0xb4   :  { %3461 = vmatprep.subr.bf16.mxu1 %v3761_v61  ;;  %v146_v61 = vcombine.high %v50_v58, %v50_v58  ;;  %v3857_v58 = vld [vmem:[#allocation5 + $0x710] sm:$0xff]  }
  0xb6   :  { %3440 = vmatpush3.bf16.msra.mxu0 %v3762_v62  ;;  %v3814_v62 = vld [vmem:[#allocation5 + $0x640] sm:$0xff]  }
  0xb7   :  { %3441 = vmatprep.subr.bf16.mxu0 %v3764_v0  ;;  %3462 = vmatpush3.bf16.msra.mxu1 %v3763_v63  ;;  %v161_v63 = vcombine.high %v153_v60, %v153_v60  ;;  %v160_v0 = vrot.slane %v146_v61, %v4043_v35  ;;  %v3860_v61 = vld [vmem:[#allocation5 + $0x7d8] sm:$0xff]  }
  0xb8   :  { %3463 = vmatprep.subr.bf16.mxu1 %v3765_v1  ;;  %v3815_v1 = vld [vmem:[#allocation5 + $0x6c0] sm:$0xff]  }
  0xba   :  { %3442 = vmatpush3.bf16.msra.mxu0 %v3766_v2  ;;  %v249_v2 = vpack.c.bf16 %v153_v60, %v153_v60  ;;  %v3858_v60 = vld [vmem:[#allocation5 + $0x790] sm:$0xff]  }
  0xbb   :  { %3443 = vmatprep.subr.bf16.mxu0 %v3768_v4  ;;  %3464 = vmatpush3.bf16.msra.mxu1 %v3767_v3  ;;  %v3816_v3 = vld [vmem:[#allocation5 + $0x600] sm:$0xff]   ;;  %v250_v4 = vpack.c.bf16 %v161_v63, %v161_v63 }
  0xbc   :  { %3465 = vmatprep.subr.bf16.mxu1 %v3769_v5  ;;  %v162_v5 = vcombine.high %v160_v0, %v160_v0  ;;  %v3863_v63 = vld [vmem:[#allocation5 + $0x760] sm:$0xff]  }
  0xbe   :  { %3444 = vmatpush3.bf16.msra.mxu0 %v3770_v6  ;;  %v3817_v6 = vld [vmem:[#allocation5 + $0x680] sm:$0xff]  }
  0xbf   :  { %3445 = vmatprep.subr.bf16.mxu0 %v3772_v8  ;;  %3466 = vmatpush3.bf16.msra.mxu1 %v3771_v7  ;;  %v251_v7 = vpack.c.bf16 %v160_v0, %v160_v0  ;;  %v3818_v8 = vld [vmem:[#allocation5 + $0x648] sm:$0xff]   ;;  %v3862_v0 = vld [vmem:[#allocation5 + $0x798] sm:$0xff]  }
  0xc0   :  { %3467 = vmatprep.subr.bf16.mxu1 %v3773_v9  ;;  %v252_v9 = vpack.c.bf16 %v162_v5, %v162_v5  ;;  %v3000_v5 = vld [vmem:[%s4090_s2] ss:$0 sm:$0xff]  ;;  %s3985_s2 = smov [#allocation7]  }
  0xc1   :  { %s2976_s15 = sshll.u32 %s3985_s2, 4  ;;  %s2977_s15 = int_to_ptr.vmem [resolvable:$true] %s2976_s15 }
  0xc2   :  { %3446 = vmatpush3.bf16.msra.mxu0 %v3774_v10  ;;  %v3819_v10 = vld [vmem:[#allocation5 + $0x6c8] sm:$0xff]   ;;  %s3928_s16 = scalar_lea.vmem %s2977_s15, 32  ;;  %p3933_p3 = scmp.lt.s32.totalorder %s2977_s15, %s2977_s15 }
  0xc3   :  { %3447 = vmatprep.subr.bf16.mxu0 %v3776_v12  ;;  %3468 = vmatpush3.bf16.msra.mxu1 %v3775_v11  ;;  %v3820_v11 = vld [vmem:[#allocation5 + $0x608] sm:$0xff]   ;;  %p3929_p2 = scmp.ne.s32.totalorder %s2977_s15, %s3928_s16  ;;  %p3934_p4 = scmp.lt.s32.totalorder %s3928_s16, %s3928_s16 }
  0xc4   :  { %3469 = vmatprep.subr.bf16.mxu1 %v3777_v13  ;;  %v3821_v12 = vld [vmem:[#allocation5 + $0x688] sm:$0xff]   ;;  %v3822_v13 = vld [vmem:[#allocation5 + $0x650] sm:$0xff]  }
  0xc5   :  { %p3935_p5 = por %p3934_p4, %p3933_p3 }
  0xc6   :  { %3448 = vmatpush3.bf16.msra.mxu0 %v3778_v14  ;;  %v3823_v14 = vld [vmem:[#allocation5 + $0x6d0] sm:$0xff]  }
  0xc7   :  { %3477 = vmatprep.subr.bf16.mxu0 %v3781_v19  ;;  %3470 = vmatpush3.bf16.msra.mxu1 %v3779_v16  ;;  %v3825_v16 = vld [vmem:[#allocation5 + $0x690] sm:$0xff]   ;;  %v3828_v19 = vld [vmem:[#allocation5 + $0x618] sm:$0xff]   ;;  %p3936_p6 = pnand %p3935_p5, %p3929_p2 }
  0xc8   :  { %3499 = vmatprep.subr.bf16.mxu1 %v3782_v22  ;;  %v3831_v22 = vld [vmem:[#allocation5 + $0x6e0] sm:$0xff]  }
  0xc9   :  { %2669 = vmatmul.mubr.bf16.vlgmr.msra.gmra.mrb[16].mxu0 %v245_v23  ;;  %v3832_v23 = vld [vmem:[#allocation5 + $0x620] sm:$0xff]  }
  0xca   :  { %3478 = vmatpush3.bf16.msra.mxu0 %v3783_v24  ;;  %2709 = vmatmul.mubr.bf16.vlgmr.msra.gmra.mrb[16].mxu1 %v247_v28  ;;  %v3833_v24 = vld [vmem:[#allocation5 + $0x6a0] sm:$0xff]   ;;  %v3837_v28 = vld [vmem:[#allocation5 + $0x6a8] sm:$0xff]  }
  0xcb   :  { %3479 = vmatprep.subr.bf16.mxu0 %v3785_v29  ;;  %3500 = vmatpush3.bf16.msra.mxu1 %v3784_v27  ;;  %v3836_v27 = vld [vmem:[#allocation5 + $0x628] sm:$0xff]   ;;  %v3838_v29 = vld [vmem:[#allocation5 + $0x670] sm:$0xff]  }
  0xcc   :  { %3501 = vmatprep.subr.bf16.mxu1 %v3786_v31  ;;  %2748 = vmatprep.mubr.bf16.mxu0 %v250_v4  ;;  %v3840_v31 = vld [vmem:[#allocation5 + $0x630] sm:$0xff]   ;;  %v3866_v4 = vld [vmem:[#allocation5 + $0x7a0] sm:$0xff]  }
  0xcd   :  { %2788 = vmatprep.mubr.bf16.mxu1 %v252_v9 }
  0xce   :  { %3480 = vmatpush3.bf16.msra.mxu0 %v3787_v32  ;;  %v3841_v32 = vld [vmem:[#allocation5 + $0x6b0] sm:$0xff]  }
  0xcf   :  { %3481 = vmatprep.subr.bf16.mxu0 %v3789_v34  ;;  %3502 = vmatpush3.bf16.msra.mxu1 %v3788_v33  ;;  %v3842_v33 = vld [vmem:[#allocation5 + $0x678] sm:$0xff]  }
  0xd0   :  { %3503 = vmatprep.subr.bf16.mxu1 %v3790_v36  ;;  %v3843_v34 = vld [vmem:[#allocation5 + $0x6f8] sm:$0xff]  }
  0xd1   :  { %v3844_v36 = vld [vmem:[#allocation5 + $0x638] sm:$0xff]  }
  0xd2   :  { %3482 = vmatpush3.bf16.msra.mxu0 %v3791_v37  ;;  %v51_v37 = vld [vmem:[#allocation2 + $0x30] sm:$0xff] }
  0xd3   :  { %3483 = vmatprep.subr.bf16.mxu0 %v3793_v39  ;;  %3504 = vmatpush3.bf16.msra.mxu1 %v3792_v38  ;;  %v170_v38 = vrot.slane %v51_v37, %v4043_v35  ;;  %v163_v39 = vcombine.high %v51_v37, %v51_v37 }
  0xd4   :  { %3505 = vmatprep.subr.bf16.mxu1 %v3794_v40  ;;  %v3847_v40 = vld [vmem:[#allocation5 + $0x740] sm:$0xff]  }
  0xd6   :  { %3484 = vmatpush3.bf16.msra.mxu0 %v3795_v41  ;;  %v3845_v41 = vld [vmem:[#allocation5 + $0x6b8] sm:$0xff]  }
  0xd7   :  { %3485 = vmatprep.subr.bf16.mxu0 %v3797_v43  ;;  %3506 = vmatpush3.bf16.msra.mxu1 %v3796_v42  ;;  %v178_v42 = vcombine.high %v170_v38, %v170_v38  ;;  %v177_v43 = vrot.slane %v163_v39, %v4043_v35 }
  0xd8   :  { %3507 = vmatprep.subr.bf16.mxu1 %v3798_v44  ;;  %v3848_v44 = vld [vmem:[#allocation5 + $0x7c0] sm:$0xff]  }
  0xda   :  { %3486 = vmatpush3.bf16.msra.mxu0 %v3799_v45  ;;  %v253_v45 = vpack.c.bf16 %v170_v38, %v170_v38 }
  0xdb   :  { %3487 = vmatprep.subr.bf16.mxu0 %v3801_v47  ;;  %3508 = vmatpush3.bf16.msra.mxu1 %v3800_v46  ;;  %v254_v46 = vpack.c.bf16 %v178_v42, %v178_v42  ;;  %v179_v47 = vcombine.high %v177_v43, %v177_v43 }
  0xdc   :  { %3509 = vmatprep.subr.bf16.mxu1 %v3802_v48  ;;  %v3849_v48 = vld [vmem:[#allocation5 + $0x700] sm:$0xff]  }
  0xde   :  { %3488 = vmatpush3.bf16.msra.mxu0 %v3803_v49  ;;  %v255_v49 = vpack.c.bf16 %v177_v43, %v177_v43 }
  0xdf   :  { %3489 = vmatprep.subr.bf16.mxu0 %v3805_v51  ;;  %3510 = vmatpush3.bf16.msra.mxu1 %v3804_v50  ;;  %v3851_v50 = vld [vmem:[#allocation5 + $0x748] sm:$0xff]   ;;  %v256_v51 = vpack.c.bf16 %v179_v47, %v179_v47 }
  0xe0   :  { %3511 = vmatprep.subr.bf16.mxu1 %v3806_v52  ;;  %v3850_v52 = vld [vmem:[#allocation5 + $0x780] sm:$0xff]  }
  0xe2   :  { %3490 = vmatpush3.bf16.msra.mxu0 %v3807_v53  ;;  %v3852_v53 = vld [vmem:[#allocation5 + $0x7c8] sm:$0xff]  }
  0xe3   :  { %3491 = vmatprep.subr.bf16.mxu0 %v3809_v55  ;;  %3512 = vmatpush3.bf16.msra.mxu1 %v3808_v54  ;;  %v3853_v54 = vld [vmem:[#allocation5 + $0x708] sm:$0xff]   ;;  %v3855_v55 = vld [vmem:[#allocation5 + $0x750] sm:$0xff]  }
  0xe4   :  { %3513 = vmatprep.subr.bf16.mxu1 %v3810_v56  ;;  %v3854_v56 = vld [vmem:[#allocation5 + $0x788] sm:$0xff]  }
  0xe6   :  { %3492 = vmatpush3.bf16.msra.mxu0 %v3811_v57  ;;  %v3856_v57 = vld [vmem:[#allocation5 + $0x7d0] sm:$0xff]  }
  0xe7   :  { %3521 = vmatprep.subr.bf16.mxu0 %v3814_v62  ;;  %3514 = vmatpush3.bf16.msra.mxu1 %v3812_v59  ;;  %v3859_v59 = vld [vmem:[#allocation5 + $0x758] sm:$0xff]  }
  0xe8   :  { %3543 = vmatprep.subr.bf16.mxu1 %v3815_v1  ;;  %v3861_v62 = vld [vmem:[#allocation5 + $0x718] sm:$0xff]   ;;  %v3864_v1 = vld [vmem:[#allocation5 + $0x7e0] sm:$0xff]  }
  0xe9   :  { %2749 = vmatmul.mubr.bf16.vlgmr.msra.gmra.mrb[20].mxu0 %v249_v2  ;;  %v3865_v2 = vld [vmem:[#allocation5 + $0x720] sm:$0xff]  }
  0xea   :  { %3522 = vmatpush3.bf16.msra.mxu0 %v3816_v3  ;;  %2789 = vmatmul.mubr.bf16.vlgmr.msra.gmra.mrb[20].mxu1 %v251_v7  ;;  %v3867_v3 = vld [vmem:[#allocation5 + $0x768] sm:$0xff]  }
  0xeb   :  { %3523 = vmatprep.subr.bf16.mxu0 %v3818_v8  ;;  %3544 = vmatpush3.bf16.msra.mxu1 %v3817_v6  ;;  %v3868_v6 = vld [vmem:[#allocation5 + $0x7e8] sm:$0xff]  }
  0xec   :  { %3545 = vmatprep.subr.bf16.mxu1 %v3819_v10  ;;  %2828 = vmatprep.mubr.bf16.mxu0 %v254_v46  ;;  %v3869_v8 = vld [vmem:[#allocation5 + $0x728] sm:$0xff]   ;;  %v3871_v10 = vld [vmem:[#allocation5 + $0x770] sm:$0xff]  }
  0xed   :  { %2868 = vmatprep.mubr.bf16.mxu1 %v256_v51 }
  0xee   :  { %3524 = vmatpush3.bf16.msra.mxu0 %v3820_v11 }
  0xef   :  { %3525 = vmatprep.subr.bf16.mxu0 %v3822_v13  ;;  %3546 = vmatpush3.bf16.msra.mxu1 %v3821_v12 }
  0xf0   :  { %3547 = vmatprep.subr.bf16.mxu1 %v3823_v14  ;;  %v3870_v14 = vld [vmem:[#allocation5 + $0x7a8] sm:$0xff]  }
  0xf2   :  { %3526 = vmatpush3.bf16.msra.mxu0 %v3824_v15  ;;  %v3872_v15 = vld [vmem:[#allocation5 + $0x7f0] sm:$0xff]  }
  0xf3   :  { %3527 = vmatprep.subr.bf16.mxu0 %v3826_v17  ;;  %3548 = vmatpush3.bf16.msra.mxu1 %v3825_v16 }
  0xf4   :  { %3549 = vmatprep.subr.bf16.mxu1 %v3827_v18 }
  0xf6   :  { %3528 = vmatpush3.bf16.msra.mxu0 %v3828_v19 }
  0xf7   :  { %3529 = vmatprep.subr.bf16.mxu0 %v3830_v21  ;;  %3550 = vmatpush3.bf16.msra.mxu1 %v3829_v20  ;;  %v3873_v21 = vld [vmem:[#allocation5 + $0x730] sm:$0xff]  }
  0xf8   :  { %3551 = vmatprep.subr.bf16.mxu1 %v3831_v22 }
  0xfa   :  { %3530 = vmatpush3.bf16.msra.mxu0 %v3832_v23  ;;  %v3875_v23 = vld [vmem:[#allocation5 + $0x778] sm:$0xff]  }
  0xfb   :  { %3531 = vmatprep.subr.bf16.mxu0 %v3834_v25  ;;  %3552 = vmatpush3.bf16.msra.mxu1 %v3833_v24  ;;  %v3874_v25 = vld [vmem:[#allocation5 + $0x7b0] sm:$0xff]  }
  0xfc   :  { %3553 = vmatprep.subr.bf16.mxu1 %v3835_v26  ;;  %v3876_v26 = vld [vmem:[#allocation5 + $0x7f8] sm:$0xff]  }
  0xfe   :  { %3532 = vmatpush3.bf16.msra.mxu0 %v3836_v27  ;;  %v3877_v27 = vld [vmem:[#allocation5 + $0x738] sm:$0xff]  }
  0xff   :  { %3533 = vmatprep.subr.bf16.mxu0 %v3838_v29  ;;  %3554 = vmatpush3.bf16.msra.mxu1 %v3837_v28  ;;  %v52_v28 = vld [vmem:[#allocation2 + $0x38] sm:$0xff] }
 0x100   :  { %3555 = vmatprep.subr.bf16.mxu1 %v3839_v30  ;;  %v187_v29 = vrot.slane %v52_v28, %v4043_v35  ;;  %v180_v30 = vcombine.high %v52_v28, %v52_v28 }
 0x102   :  { %3534 = vmatpush3.bf16.msra.mxu0 %v3840_v31  ;;  %v3878_v31 = vld [vmem:[#allocation5 + $0x7b8] sm:$0xff]  }
 0x103   :  { %3535 = vmatprep.subr.bf16.mxu0 %v3842_v33  ;;  %3556 = vmatpush3.bf16.msra.mxu1 %v3841_v32  ;;  %v195_v32 = vcombine.high %v187_v29, %v187_v29  ;;  %v194_v33 = vrot.slane %v180_v30, %v4043_v35 }
 0x104   :  { %3557 = vmatprep.subr.bf16.mxu1 %v3843_v34  ;;  %v257_v34 = vpack.c.bf16 %v187_v29, %v187_v29 }
 0x105   :  { %v196_v37 = vcombine.high %v194_v33, %v194_v33  ;;  %v259_v38 = vpack.c.bf16 %v194_v33, %v194_v33 }
 0x106   :  { %3536 = vmatpush3.bf16.msra.mxu0 %v3844_v36  ;;  %v258_v36 = vpack.c.bf16 %v195_v32, %v195_v32 }
 0x107   :  { %3565 = vmatprep.subr.bf16.mxu0 %v3847_v40  ;;  %3558 = vmatpush3.bf16.msra.mxu1 %v3845_v41  ;;  %v260_v39 = vpack.c.bf16 %v196_v37, %v196_v37 }
 0x108   :  { %3587 = vmatprep.subr.bf16.mxu1 %v3848_v44 }
 0x109   :  { %2829 = vmatmul.mubr.bf16.vlgmr.msra.gmra.mrb[24].mxu0 %v253_v45 }
 0x10a   :  { %3566 = vmatpush3.bf16.msra.mxu0 %v3849_v48  ;;  %2869 = vmatmul.mubr.bf16.vlgmr.msra.gmra.mrb[24].mxu1 %v255_v49 }
 0x10b   :  { %3567 = vmatprep.subr.bf16.mxu0 %v3851_v50  ;;  %3588 = vmatpush3.bf16.msra.mxu1 %v3850_v52 }
 0x10c   :  { %3589 = vmatprep.subr.bf16.mxu1 %v3852_v53  ;;  %2908 = vmatprep.mubr.bf16.mxu0 %v258_v36 }
 0x10d   :  { %2948 = vmatprep.mubr.bf16.mxu1 %v260_v39 }
 0x10e   :  { %3568 = vmatpush3.bf16.msra.mxu0 %v3853_v54 }
 0x10f   :  { %3569 = vmatprep.subr.bf16.mxu0 %v3855_v55  ;;  %3590 = vmatpush3.bf16.msra.mxu1 %v3854_v56 }
 0x110   :  { %3591 = vmatprep.subr.bf16.mxu1 %v3856_v57 }
 0x112   :  { %3570 = vmatpush3.bf16.msra.mxu0 %v3857_v58 }
 0x113   :  { %3571 = vmatprep.subr.bf16.mxu0 %v3859_v59  ;;  %3592 = vmatpush3.bf16.msra.mxu1 %v3858_v60 }
 0x114   :  { %3593 = vmatprep.subr.bf16.mxu1 %v3860_v61 }
 0x116   :  { %3572 = vmatpush3.bf16.msra.mxu0 %v3861_v62 }
 0x117   :  { %3573 = vmatprep.subr.bf16.mxu0 %v3863_v63  ;;  %3594 = vmatpush3.bf16.msra.mxu1 %v3862_v0 }
 0x118   :  { %3595 = vmatprep.subr.bf16.mxu1 %v3864_v1 }
 0x11a   :  { %3574 = vmatpush3.bf16.msra.mxu0 %v3865_v2 }
 0x11b   :  { %3575 = vmatprep.subr.bf16.mxu0 %v3867_v3  ;;  %3596 = vmatpush3.bf16.msra.mxu1 %v3866_v4 }
 0x11c   :  { %v3273_v7 = vpop.f32.mrb[0].mxu0  ;;  %3597 = vmatprep.subr.bf16.mxu1 %v3868_v6 }
 0x11d   :  { %v3274_v9 = vpop.f32.mrb[1].mxu0  ;;  %v3295_v11 = vpop.f32.mrb[0].mxu1 }
 0x11e   :  { %v3275_v12 = vadd.f32 %v3274_v9, %v3273_v7  ;;  %v3276_v13 = vpop.f32.mrb[2].mxu0  ;;  %v3296_v16 = vpop.f32.mrb[1].mxu1  ;;  %3576 = vmatpush3.bf16.msra.mxu0 %v3869_v8 }
 0x11f   :  { %v3277_v17 = vpop.f32.mrb[3].mxu0  ;;  %v3297_v19 = vadd.f32 %v3296_v16, %v3295_v11  ;;  %v3298_v20 = vpop.f32.mrb[2].mxu1  ;;  %3577 = vmatprep.subr.bf16.mxu0 %v3871_v10  ;;  %3598 = vmatpush3.bf16.msra.mxu1 %v3870_v14 }
 0x120   :  { %v2351_v18 = vadd.f32 %v3275_v12, %v3000_v5  ;;  %v3299_v22 = vpop.f32.mrb[3].mxu1  ;;  %3599 = vmatprep.subr.bf16.mxu1 %v3872_v15 }
 0x122   :  { %v2391_v24 = vadd.f32 %v3297_v19, %v2351_v18  ;;  %3578 = vmatpush3.bf16.msra.mxu0 %v3873_v21 }
 0x123   :  { %3579 = vmatprep.subr.bf16.mxu0 %v3875_v23  ;;  %3600 = vmatpush3.bf16.msra.mxu1 %v3874_v25 }
 0x124   :  { %3601 = vmatprep.subr.bf16.mxu1 %v3876_v26 }
 0x126   :  { %3580 = vmatpush3.bf16.msra.mxu0 %v3877_v27 }
 0x127   :  { %3602 = vmatpush3.bf16.msra.mxu1 %v3878_v31 }
 0x129   :  { %2909 = vmatmul.mubr.bf16.vlgmr.msra.gmra.mrb[28].mxu0 %v257_v34 }
 0x12a   :  { %2949 = vmatmul.mubr.bf16.vlgmr.msra.gmra.mrb[28].mxu1 %v259_v38 }
 0x13c   :  { %v3317_v40 = vpop.f32.mrb[4].mxu0 }
 0x13d   :  { %v3318_v41 = vpop.f32.mrb[5].mxu0  ;;  %v3339_v42 = vpop.f32.mrb[4].mxu1 }
 0x13e   :  { %v3319_v43 = vadd.f32 %v3318_v41, %v3317_v40  ;;  %v3320_v44 = vpop.f32.mrb[6].mxu0  ;;  %v3340_v45 = vpop.f32.mrb[5].mxu1 }
 0x13f   :  { %v3321_v46 = vpop.f32.mrb[7].mxu0  ;;  %v3341_v35 = vadd.f32 %v3340_v45, %v3339_v42  ;;  %v3342_v48 = vpop.f32.mrb[6].mxu1 }
 0x140   :  { %v2431_v47 = vadd.f32 %v3319_v43, %v2391_v24  ;;  %v3343_v49 = vpop.f32.mrb[7].mxu1 }
 0x142   :  { %v2471_v50 = vadd.f32 %v3341_v35, %v2431_v47 }
 0x15c   :  { %v3361_v51 = vpop.f32.mrb[8].mxu0 }
 0x15d   :  { %v3362_v52 = vpop.f32.mrb[9].mxu0  ;;  %v3383_v53 = vpop.f32.mrb[8].mxu1 }
 0x15e   :  { %v3363_v54 = vadd.f32 %v3362_v52, %v3361_v51  ;;  %v3364_v55 = vpop.f32.mrb[10].mxu0  ;;  %v3384_v56 = vpop.f32.mrb[9].mxu1 }
 0x15f   :  { %v3365_v57 = vpop.f32.mrb[11].mxu0  ;;  %v3385_v59 = vadd.f32 %v3384_v56, %v3383_v53  ;;  %v3386_v60 = vpop.f32.mrb[10].mxu1 }
 0x160   :  { %v2511_v58 = vadd.f32 %v3363_v54, %v2471_v50  ;;  %v3387_v61 = vpop.f32.mrb[11].mxu1 }
 0x162   :  { %v2551_v62 = vadd.f32 %v3385_v59, %v2511_v58 }
 0x17c   :  { %v3405_v63 = vpop.f32.mrb[12].mxu0 }
 0x17d   :  { %v3406_v0 = vpop.f32.mrb[13].mxu0  ;;  %v3427_v1 = vpop.f32.mrb[12].mxu1 }
 0x17e   :  { %v3407_v2 = vadd.f32 %v3406_v0, %v3405_v63  ;;  %v3408_v3 = vpop.f32.mrb[14].mxu0  ;;  %v3428_v4 = vpop.f32.mrb[13].mxu1 }
 0x17f   :  { %v3409_v5 = vpop.f32.mrb[15].mxu0  ;;  %v3429_v7 = vadd.f32 %v3428_v4, %v3427_v1  ;;  %v3430_v8 = vpop.f32.mrb[14].mxu1 }
 0x180   :  { %v2591_v6 = vadd.f32 %v3407_v2, %v2551_v62  ;;  %v3431_v9 = vpop.f32.mrb[15].mxu1 }
 0x182   :  { %v2631_v10 = vadd.f32 %v3429_v7, %v2591_v6 }
 0x19c   :  { %v3449_v11 = vpop.f32.mrb[16].mxu0 }
 0x19d   :  { %v3450_v12 = vpop.f32.mrb[17].mxu0  ;;  %v3471_v13 = vpop.f32.mrb[16].mxu1 }
 0x19e   :  { %v3451_v14 = vadd.f32 %v3450_v12, %v3449_v11  ;;  %v3452_v15 = vpop.f32.mrb[18].mxu0  ;;  %v3472_v16 = vpop.f32.mrb[17].mxu1 }
 0x19f   :  { %v3453_v17 = vpop.f32.mrb[19].mxu0  ;;  %v3473_v19 = vadd.f32 %v3472_v16, %v3471_v13  ;;  %v3474_v20 = vpop.f32.mrb[18].mxu1 }
 0x1a0   :  { %v2671_v18 = vadd.f32 %v3451_v14, %v2631_v10  ;;  %v3475_v21 = vpop.f32.mrb[19].mxu1 }
 0x1a2   :  { %v2711_v22 = vadd.f32 %v3473_v19, %v2671_v18 }
 0x1bc   :  { %v3493_v23 = vpop.f32.mrb[20].mxu0 }
 0x1bd   :  { %v3494_v24 = vpop.f32.mrb[21].mxu0  ;;  %v3515_v25 = vpop.f32.mrb[20].mxu1 }
 0x1be   :  { %v3495_v26 = vadd.f32 %v3494_v24, %v3493_v23  ;;  %v3496_v27 = vpop.f32.mrb[22].mxu0  ;;  %v3516_v28 = vpop.f32.mrb[21].mxu1 }
 0x1bf   :  { %v3497_v29 = vpop.f32.mrb[23].mxu0  ;;  %v3517_v31 = vadd.f32 %v3516_v28, %v3515_v25  ;;  %v3518_v32 = vpop.f32.mrb[22].mxu1 }
 0x1c0   :  { %v2751_v30 = vadd.f32 %v3495_v26, %v2711_v22  ;;  %v3519_v33 = vpop.f32.mrb[23].mxu1 }
 0x1c2   :  { %v2791_v34 = vadd.f32 %v3517_v31, %v2751_v30 }
 0x1dc   :  { %v3537_v36 = vpop.f32.mrb[24].mxu0 }
 0x1dd   :  { %v3538_v37 = vpop.f32.mrb[25].mxu0  ;;  %v3559_v38 = vpop.f32.mrb[24].mxu1 }
 0x1de   :  { %v3539_v39 = vadd.f32 %v3538_v37, %v3537_v36  ;;  %v3540_v40 = vpop.f32.mrb[26].mxu0  ;;  %v3560_v41 = vpop.f32.mrb[25].mxu1 }
 0x1df   :  { %v3541_v42 = vpop.f32.mrb[27].mxu0  ;;  %v3561_v44 = vadd.f32 %v3560_v41, %v3559_v38  ;;  %v3562_v45 = vpop.f32.mrb[26].mxu1 }
 0x1e0   :  { %v2831_v43 = vadd.f32 %v3539_v39, %v2791_v34  ;;  %v3563_v46 = vpop.f32.mrb[27].mxu1 }
 0x1e2   :  { %v2871_v47 = vadd.f32 %v3561_v44, %v2831_v43 }
 0x1fc   :  { %v3581_v35 = vpop.f32.mrb[28].mxu0 }
 0x1fd   :  { %v3582_v48 = vpop.f32.mrb[29].mxu0  ;;  %v3603_v49 = vpop.f32.mrb[28].mxu1 }
 0x1fe   :  { %v3583_v50 = vadd.f32 %v3582_v48, %v3581_v35  ;;  %v3584_v51 = vpop.f32.mrb[30].mxu0  ;;  %v3604_v52 = vpop.f32.mrb[29].mxu1 }
 0x1ff   :  { %v3585_v53 = vpop.f32.mrb[31].mxu0  ;;  %v3605_v55 = vadd.f32 %v3604_v52, %v3603_v49  ;;  %v3606_v56 = vpop.f32.mrb[30].mxu1 }
 0x200   :  { %v2911_v54 = vadd.f32 %v3583_v50, %v2871_v47  ;;  %v3607_v57 = vpop.f32.mrb[31].mxu1 }
 0x202   :  { %v2951_v58 = vadd.f32 %v3605_v55, %v2911_v54 }
 0x204   :  { %2956 = vst [vmem:[#allocation7] sm:$0x3] %v2951_v58  ;;  %v2958_v59 = vsel %vm2957_vm0, %v2951_v58, -inf }
 0x205   :  { %2959 = vmax.xlane.f32.xlu0 %v2958_v59 }
 0x292   :  { %v2960_v60 = vpop.xlane.xlu0 %2959 }
 0x293   :  { %v2961_v61 = vsub.f32 %v2951_v58, %v2960_v60 }
 0x295   :  { %v2962_v62 = vmul.f32 1.442695, %v2961_v61 }
 0x297   :  { %3880 = vpow2.f32 %v2962_v62 }
 0x2a1   :  { %v3881_v63 = vpop.eup %3880 }
 0x2a2   :  { %v2964_v0 = vsel %vm2957_vm0, %v3881_v63, 0.0 }
 0x2a3   :  { %2965 = vadd.xlane.f32.xlu0 %v2964_v0 }
 0x2a4   :  { %3939 = shalt.err (!%p3936_p6)
}
 0x2a5   :  { %s3940_s19 = scalar_lea.hbm %s4091_s3, 32 }
 0x2a6   :  { %p3941_p7 = scmp.ne.s32.totalorder %s4091_s3, %s3940_s19  ;;  %p3944_p8 = scmp.lt.u32.totalorder %s3940_s19, %s4091_s3 }
 0x2a8   :  { %p3946_p9 = pnand %p3944_p8, %p3941_p7 }
 0x2aa   :  { %3949 = shalt.err (!%p3946_p9)
}
 0x2ab   :  { %2979 = dma.vmem_to_hbm [thread:$0]  %s2977_s15, 32, %s4091_s3, [#allocation4]  }
 0x2ac   :  { %s3986_s26 = smov [#allocation8]  }
 0x2ad   :  { %s2986_s27 = sshll.u32 %s3986_s26, 4  ;;  %s2987_s27 = int_to_ptr.vmem [resolvable:$true] %s2986_s27 }
 0x2ae   :  { %s3950_s28 = scalar_lea.vmem %s2987_s27, 32  ;;  %p3955_p11 = scmp.lt.s32.totalorder %s2987_s27, %s2987_s27 }
 0x2af   :  { %p3951_p10 = scmp.ne.s32.totalorder %s2987_s27, %s3950_s28  ;;  %p3956_p12 = scmp.lt.s32.totalorder %s3950_s28, %s3950_s28 }
 0x2b1   :  { %p3957_p13 = por %p3956_p12, %p3955_p11 }
 0x2b3   :  { %p3958_p0 = pnand %p3957_p13, %p3951_p10 }
 0x330   :  { %v2966_v1 = vpop.xlane.xlu0 %2965 }
 0x331   :  { %3882 = vrcp.f32 %v2966_v1 }
 0x33b   :  { %v3883_v2 = vpop.eup %3882 }
 0x33c   :  { %v2968_v3 = vmul.f32 %v3883_v2, %v3881_v63 }
 0x33e   :  { %2969 = vst [vmem:[#allocation8] sm:$0x3] %v2968_v3 }
 0x33f   :  { %3961 = shalt.err (!%p3958_p0)
}
 0x340   :  { %s3962_s5 = scalar_lea.hbm %s4092_s4, 32 }
 0x341   :  { %p3963_p1 = scmp.ne.s32.totalorder %s4092_s4, %s3962_s5  ;;  %p3966_p2 = scmp.lt.u32.totalorder %s3962_s5, %s4092_s4 }
 0x343   :  { %p3968_p3 = pnand %p3966_p2, %p3963_p1 }
 0x345   :  { %3971 = shalt.err (!%p3968_p3)
}
 0x346   :  { %2989 = dma.vmem_to_hbm [thread:$0]  %s2987_s27, 32, %s4092_s4, [#allocation9]  }
 0x347   :  { %3976 = dma.done.wait [#allocation4], 32  }
 0x348   :  { %3977 = vsyncadd [#allocation4], 4294967264 }
 0x349   :  { %3978 = dma.done.wait [#allocation9], 32  }
 0x34a   :  { %3979 = vsyncadd [#allocation9], 4294967264 }
 0x34b   :  { %2996 = vsyncpa [#allocation3], 1 }
 0x34c   :  { %2997 = vsyncpa [#allocation6], 1 }
 0x34d   :  { %2998 = vsyncpa [#allocation4], 1 }
 0x34e   :  { %2999 = vsyncpa [#allocation9], 1 }

// kernel: tpu_custom_call.1
= control target key start
LH: loop header
LB: loop body
LE: loop exit
PB: predicated region body
PF: predicated region fallthrough
CT: control target
= control target key end

     0   :  { %10 = vsyncpa [#allocation3], 0  ;;  %s4088_s0 = inlined_call_operand.hbm [shape: f32[2,4096], index: 0, kind: input, shape index: {}]   ;;  %s4089_s1 = inlined_call_operand.hbm [shape: bf16[4096,128], index: 1, kind: input, shape index: {}]   ;;  %s4090_s2 = inlined_call_operand.vmem [shape: f32[1,128], index: 2, kind: input, shape index: {}]   ;;  %s4091_s3 = inlined_call_operand.hbm [shape: f32[2,128], index: 3, kind: output, shape index: {0}]   ;;  %s4092_s4 = inlined_call_operand.hbm [shape: f32[2,128], index: 4, kind: output, shape index: {1}]  }
   0x1   :  { %11 = vsyncpa [#allocation6], 0 }
   0x2   :  { %12 = vsyncpa [#allocation4], 0 }
   0x3   :  { %13 = vsyncpa [#allocation9], 0  ;;  %s3980_s15 = smov [#allocation2]   ;;  %s3981_s17 = smov [#allocation5]  }
   0x4   :  { %s20_s16 = sshll.u32 %s3980_s15, 4  ;;  %s29_s18 = sshll.u32 %s3981_s17, 4  ;;  %s21_s16 = int_to_ptr.vmem [resolvable:$true] %s20_s16  ;;  %s4012_s18 = int_to_ptr.vmem [resolvable:$true] %s29_s18 }
   0x5   :  { %s3884_s21 = scalar_lea.hbm %s4088_s0, 1024 }
   0x6   :  { %p3885_p0 = scmp.ne.s32.totalorder %s4088_s0, %s3884_s21  ;;  %p3888_p1 = scmp.lt.u32.totalorder %s3884_s21, %s4088_s0 }
   0x8   :  { %p3890_p2 = pnand %p3888_p1, %p3885_p0 }
   0xa   :  { %3893 = shalt.err (!%p3890_p2)
}
   0xb   :  { %s3894_s26 = scalar_lea.vmem %s21_s16, 1024  ;;  %p3899_p4 = scmp.lt.s32.totalorder %s21_s16, %s21_s16 }
   0xc   :  { %p3895_p3 = scmp.ne.s32.totalorder %s21_s16, %s3894_s26  ;;  %p3900_p5 = scmp.lt.s32.totalorder %s3894_s26, %s3894_s26 }
   0xe   :  { %p3901_p6 = por %p3900_p5, %p3899_p4 }
  0x10   :  { %p3902_p7 = pnand %p3901_p6, %p3895_p3 }
  0x12   :  { %3905 = shalt.err (!%p3902_p7)
}
  0x13   :  { %23 = dma.hbm_to_vmem [thread:$0]  %s4088_s0, 1024, %s21_s16, [#allocation3]  }
  0x14   :  { %s3906_s5 = scalar_lea.hbm %s4089_s1, 32768 }
  0x15   :  { %p3907_p8 = scmp.ne.s32.totalorder %s4089_s1, %s3906_s5  ;;  %p3910_p9 = scmp.lt.u32.totalorder %s3906_s5, %s4089_s1 }
  0x17   :  { %p3912_p10 = pnand %p3910_p9, %p3907_p8 }
  0x19   :  { %3915 = shalt.err (!%p3912_p10)
}
  0x1a   :  { %s3916_s10 = scalar_lea.vmem %s4012_s18, 32768  ;;  %p3921_p12 = scmp.lt.s32.totalorder %s4012_s18, %s4012_s18 }
  0x1b   :  { %p3917_p11 = scmp.ne.s32.totalorder %s4012_s18, %s3916_s10  ;;  %p3922_p13 = scmp.lt.s32.totalorder %s3916_s10, %s3916_s10 }
  0x1d   :  { %p3923_p0 = por %p3922_p13, %p3921_p12 }
  0x1f   :  { %p3924_p1 = pnand %p3923_p0, %p3917_p11 }
  0x21   :  { %3927 = shalt.err (!%p3924_p1)
}
  0x22   :  { %s3982_s0 = smov 64   ;;  %s3983_s11 = smov 4  }
  0x23   :  { %35 = dma.hbm_to_vmem [thread:$0]  %s4089_s1, 32768, %s4012_s18, [#allocation6], %s3982_s0, %s3982_s0, %s3983_s11  }
  0x24   :  { %3972 = dma.done.wait [#allocation3], 1024  }
  0x25   :  { %3973 = vsyncadd [#allocation3], 4294966272 }
  0x26   :  { %3974 = dma.done.wait [#allocation6], 32768  }
  0x27   :  { %3975 = vsyncadd [#allocation6], 4294934528  ;;  %v3616_v0 = vld [vmem:[#allocation5 + $0x40] sm:$0xff]   ;;  %v3620_v4 = vld [vmem:[#allocation5 + $0x48] sm:$0xff]   ;;  %v3984_v22 = vmov 1983009808   ;;  %v65_v24 = vlaneseq }
  0x28   :  { %v3617_v1 = vld [vmem:[#allocation5 + $0xc0] sm:$0xff]   ;;  %3257 = vmatprep.subr.bf16.mxu0 %v3616_v0  ;;  %v3621_v5 = vld [vmem:[#allocation5 + $0xc8] sm:$0xff]   ;;  %v3624_v8 = vld [vmem:[#allocation5 + $0x50] sm:$0xff]   ;;  %v63_v23 = vunpack.c.l.s4 %v3984_v22  ;;  %vm2957_vm0 = vcmask 1041408  }
  0x29   :  { %v3618_v2 = vld [vmem:[#allocation5] sm:$0xff]   ;;  %3279 = vmatprep.subr.bf16.mxu1 %v3617_v1  ;;  %v3622_v6 = vld [vmem:[#allocation5 + $0x8] sm:$0xff]   ;;  %v3625_v9 = vld [vmem:[#allocation5 + $0xd0] sm:$0xff]   ;;  %v66_v30 = vshrl.u32 %v65_v24, 7 }
  0x2a   :  { %v3619_v3 = vld [vmem:[#allocation5 + $0x80] sm:$0xff]   ;;  %3258 = vmatpush3.bf16.msra.mxu0 %v3618_v2  ;;  %v3623_v7 = vld [vmem:[#allocation5 + $0x88] sm:$0xff]   ;;  %v3626_v10 = vld [vmem:[#allocation5 + $0x10] sm:$0xff]   ;;  %v64_v29 = vunpack.c.0.s8 %v63_v23 }
  0x2b   :  { %3280 = vmatpush3.bf16.msra.mxu1 %v3619_v3  ;;  %3259 = vmatprep.subr.bf16.mxu0 %v3620_v4  ;;  %v3627_v11 = vld [vmem:[#allocation5 + $0x90] sm:$0xff]   ;;  %v3628_v12 = vld [vmem:[#allocation5 + $0x58] sm:$0xff]   ;;  %v3632_v16 = vld [vmem:[#allocation5 + $0x60] sm:$0xff]  }
  0x2c   :  { %3281 = vmatprep.subr.bf16.mxu1 %v3621_v5  ;;  %v3629_v13 = vld [vmem:[#allocation5 + $0xd8] sm:$0xff]   ;;  %v3633_v17 = vld [vmem:[#allocation5 + $0xe0] sm:$0xff]   ;;  %v3636_v20 = vld [vmem:[#allocation5 + $0x68] sm:$0xff]   ;;  %v4043_v35 = vsub.s32 %v64_v29, %v66_v30 }
  0x2d   :  { %v3630_v14 = vld [vmem:[#allocation5 + $0x18] sm:$0xff]   ;;  %v3634_v18 = vld [vmem:[#allocation5 + $0x20] sm:$0xff]   ;;  %v3637_v21 = vld [vmem:[#allocation5 + $0xe8] sm:$0xff]  }
  0x2e   :  { %3260 = vmatpush3.bf16.msra.mxu0 %v3622_v6  ;;  %v3631_v15 = vld [vmem:[#allocation5 + $0x98] sm:$0xff]   ;;  %v3635_v19 = vld [vmem:[#allocation5 + $0xa0] sm:$0xff]   ;;  %v3638_v25 = vld [vmem:[#allocation5 + $0x28] sm:$0xff]  }
  0x2f   :  { %3282 = vmatpush3.bf16.msra.mxu1 %v3623_v7  ;;  %3261 = vmatprep.subr.bf16.mxu0 %v3624_v8  ;;  %v3639_v26 = vld [vmem:[#allocation5 + $0xa8] sm:$0xff]   ;;  %v3640_v27 = vld [vmem:[#allocation5 + $0x70] sm:$0xff]   ;;  %v3644_v33 = vld [vmem:[#allocation5 + $0x78] sm:$0xff]  }
  0x30   :  { %3283 = vmatprep.subr.bf16.mxu1 %v3625_v9  ;;  %v3641_v28 = vld [vmem:[#allocation5 + $0xf0] sm:$0xff]   ;;  %v3645_v34 = vld [vmem:[#allocation5 + $0xf8] sm:$0xff]   ;;  %v45_v38 = vld [vmem:[#allocation2] sm:$0xff] }
  0x31   :  { %v3642_v31 = vld [vmem:[#allocation5 + $0x30] sm:$0xff]   ;;  %v3646_v36 = vld [vmem:[#allocation5 + $0x38] sm:$0xff]   ;;  %v68_v39 = vrot.slane %v45_v38, %v4043_v35  ;;  %v61_v40 = vcombine.high %v45_v38, %v45_v38  ;;  %v3649_v41 = vld [vmem:[#allocation5 + $0x140] sm:$0xff]  }
  0x32   :  { %3262 = vmatpush3.bf16.msra.mxu0 %v3626_v10  ;;  %v3643_v32 = vld [vmem:[#allocation5 + $0xb0] sm:$0xff]   ;;  %v3647_v37 = vld [vmem:[#allocation5 + $0xb8] sm:$0xff]   ;;  %v3650_v42 = vld [vmem:[#allocation5 + $0x1c0] sm:$0xff]  }
  0x33   :  { %3284 = vmatpush3.bf16.msra.mxu1 %v3627_v11  ;;  %3263 = vmatprep.subr.bf16.mxu0 %v3628_v12  ;;  %v76_v43 = vcombine.high %v68_v39, %v68_v39  ;;  %v75_v44 = vrot.slane %v61_v40, %v4043_v35  ;;  %v229_v45 = vpack.c.bf16 %v68_v39, %v68_v39  ;;  %v3651_v46 = vld [vmem:[#allocation5 + $0x100] sm:$0xff]   ;;  %v3653_v51 = vld [vmem:[#allocation5 + $0x148] sm:$0xff]   ;;  %v3657_v56 = vld [vmem:[#allocation5 + $0x150] sm:$0xff]  }
  0x34   :  { %3285 = vmatprep.subr.bf16.mxu1 %v3629_v13  ;;  %v3652_v49 = vld [vmem:[#allocation5 + $0x180] sm:$0xff]   ;;  %v3654_v53 = vld [vmem:[#allocation5 + $0x1c8] sm:$0xff]   ;;  %v3658_v57 = vld [vmem:[#allocation5 + $0x1d0] sm:$0xff]  }
  0x35   :  { %v230_v47 = vpack.c.bf16 %v76_v43, %v76_v43  ;;  %v77_v48 = vcombine.high %v75_v44, %v75_v44  ;;  %v231_v50 = vpack.c.bf16 %v75_v44, %v75_v44  ;;  %v3655_v54 = vld [vmem:[#allocation5 + $0x108] sm:$0xff]   ;;  %v3659_v58 = vld [vmem:[#allocation5 + $0x110] sm:$0xff]   ;;  %v3661_v60 = vld [vmem:[#allocation5 + $0x158] sm:$0xff]  }
  0x36   :  { %3264 = vmatpush3.bf16.msra.mxu0 %v3630_v14  ;;  %v3656_v55 = vld [vmem:[#allocation5 + $0x188] sm:$0xff]   ;;  %v3660_v59 = vld [vmem:[#allocation5 + $0x190] sm:$0xff]   ;;  %v3662_v61 = vld [vmem:[#allocation5 + $0x1d8] sm:$0xff]  }
  0x37   :  { %3286 = vmatpush3.bf16.msra.mxu1 %v3631_v15  ;;  %3265 = vmatprep.subr.bf16.mxu0 %v3632_v16  ;;  %v232_v52 = vpack.c.bf16 %v77_v48, %v77_v48  ;;  %v3663_v62 = vld [vmem:[#allocation5 + $0x118] sm:$0xff]   ;;  %v3665_v0 = vld [vmem:[#allocation5 + $0x160] sm:$0xff]   ;;  %v3669_v4 = vld [vmem:[#allocation5 + $0x168] sm:$0xff]  }
  0x38   :  { %3287 = vmatprep.subr.bf16.mxu1 %v3633_v17  ;;  %2348 = vmatprep.mubr.bf16.mxu0 %v230_v47  ;;  %v3664_v63 = vld [vmem:[#allocation5 + $0x198] sm:$0xff]   ;;  %v3666_v1 = vld [vmem:[#allocation5 + $0x1e0] sm:$0xff]   ;;  %v3670_v5 = vld [vmem:[#allocation5 + $0x1e8] sm:$0xff]  }
  0x39   :  { %2388 = vmatprep.mubr.bf16.mxu1 %v232_v52  ;;  %v3667_v2 = vld [vmem:[#allocation5 + $0x120] sm:$0xff]   ;;  %v3671_v6 = vld [vmem:[#allocation5 + $0x128] sm:$0xff]   ;;  %v3673_v8 = vld [vmem:[#allocation5 + $0x170] sm:$0xff]  }
  0x3a   :  { %3266 = vmatpush3.bf16.msra.mxu0 %v3634_v18  ;;  %v3668_v3 = vld [vmem:[#allocation5 + $0x1a0] sm:$0xff]   ;;  %v3672_v7 = vld [vmem:[#allocation5 + $0x1a8] sm:$0xff]   ;;  %v3674_v9 = vld [vmem:[#allocation5 + $0x1f0] sm:$0xff]  }
  0x3b   :  { %3288 = vmatpush3.bf16.msra.mxu1 %v3635_v19  ;;  %3267 = vmatprep.subr.bf16.mxu0 %v3636_v20  ;;  %v3675_v10 = vld [vmem:[#allocation5 + $0x130] sm:$0xff]   ;;  %v3677_v12 = vld [vmem:[#allocation5 + $0x178] sm:$0xff]   ;;  %v46_v15 = vld [vmem:[#allocation2 + $0x8] sm:$0xff] }
  0x3c   :  { %3289 = vmatprep.subr.bf16.mxu1 %v3637_v21  ;;  %v3676_v11 = vld [vmem:[#allocation5 + $0x1b0] sm:$0xff]   ;;  %v3678_v13 = vld [vmem:[#allocation5 + $0x1f8] sm:$0xff]   ;;  %v85_v17 = vrot.slane %v46_v15, %v4043_v35  ;;  %v78_v18 = vcombine.high %v46_v15, %v46_v15  ;;  %v3682_v19 = vld [vmem:[#allocation5 + $0x240] sm:$0xff]  }
  0x3d   :  { %v3679_v14 = vld [vmem:[#allocation5 + $0x138] sm:$0xff]   ;;  %v3683_v22 = vld [vmem:[#allocation5 + $0x2c0] sm:$0xff]   ;;  %v3686_v29 = vld [vmem:[#allocation5 + $0x248] sm:$0xff]  }
  0x3e   :  { %3268 = vmatpush3.bf16.msra.mxu0 %v3638_v25  ;;  %v3680_v16 = vld [vmem:[#allocation5 + $0x1b8] sm:$0xff]   ;;  %v93_v20 = vcombine.high %v85_v17, %v85_v17  ;;  %v92_v21 = vrot.slane %v78_v18, %v4043_v35  ;;  %v233_v23 = vpack.c.bf16 %v85_v17, %v85_v17  ;;  %v3684_v24 = vld [vmem:[#allocation5 + $0x200] sm:$0xff]   ;;  %v3693_v38 = vld [vmem:[#allocation5 + $0x290] sm:$0xff]  }
  0x3f   :  { %3290 = vmatpush3.bf16.msra.mxu1 %v3639_v26  ;;  %3269 = vmatprep.subr.bf16.mxu0 %v3640_v27  ;;  %v3685_v27 = vld [vmem:[#allocation5 + $0x280] sm:$0xff]   ;;  %v3694_v39 = vld [vmem:[#allocation5 + $0x258] sm:$0xff]   ;;  %v3702_v47 = vld [vmem:[#allocation5 + $0x268] sm:$0xff]  }
  0x40   :  { %3291 = vmatprep.subr.bf16.mxu1 %v3641_v28  ;;  %v234_v25 = vpack.c.bf16 %v93_v20, %v93_v20  ;;  %v94_v26 = vcombine.high %v92_v21, %v92_v21  ;;  %v235_v28 = vpack.c.bf16 %v92_v21, %v92_v21  ;;  %v3695_v40 = vld [vmem:[#allocation5 + $0x2d8] sm:$0xff]   ;;  %v3698_v43 = vld [vmem:[#allocation5 + $0x260] sm:$0xff]   ;;  %v3703_v48 = vld [vmem:[#allocation5 + $0x2e8] sm:$0xff]  }
  0x41   :  { %v3699_v44 = vld [vmem:[#allocation5 + $0x2e0] sm:$0xff]   ;;  %v3707_v52 = vld [vmem:[#allocation5 + $0x2f0] sm:$0xff]   ;;  %v3727_v17 = vld [vmem:[#allocation5 + $0x358] sm:$0xff]  }
  0x42   :  { %3270 = vmatpush3.bf16.msra.mxu0 %v3642_v31  ;;  %v236_v30 = vpack.c.bf16 %v94_v26, %v94_v26  ;;  %v3687_v31 = vld [vmem:[#allocation5 + $0x2c8] sm:$0xff]   ;;  %v3725_v15 = vld [vmem:[#allocation5 + $0x310] sm:$0xff]   ;;  %v3728_v18 = vld [vmem:[#allocation5 + $0x3d8] sm:$0xff]  }
  0x43   :  { %3292 = vmatpush3.bf16.msra.mxu1 %v3643_v32  ;;  %3271 = vmatprep.subr.bf16.mxu0 %v3644_v33  ;;  %v3688_v32 = vld [vmem:[#allocation5 + $0x208] sm:$0xff]   ;;  %v3730_v20 = vld [vmem:[#allocation5 + $0x398] sm:$0xff]   ;;  %v3731_v21 = vld [vmem:[#allocation5 + $0x360] sm:$0xff]  }
  0x44   :  { %3293 = vmatprep.subr.bf16.mxu1 %v3645_v34  ;;  %v3689_v33 = vld [vmem:[#allocation5 + $0x288] sm:$0xff]   ;;  %v3690_v34 = vld [vmem:[#allocation5 + $0x250] sm:$0xff]  }
  0x45   :  { %v3736_v26 = vld [vmem:[#allocation5 + $0x3e8] sm:$0xff]  }
  0x46   :  { %3272 = vmatpush3.bf16.msra.mxu0 %v3646_v36  ;;  %v3691_v36 = vld [vmem:[#allocation5 + $0x2d0] sm:$0xff]  }
  0x47   :  { %3294 = vmatpush3.bf16.msra.mxu1 %v3647_v37  ;;  %3301 = vmatprep.subr.bf16.mxu0 %v3649_v41  ;;  %v3692_v37 = vld [vmem:[#allocation5 + $0x210] sm:$0xff]   ;;  %v3696_v41 = vld [vmem:[#allocation5 + $0x218] sm:$0xff]  }
  0x48   :  { %3323 = vmatprep.subr.bf16.mxu1 %v3650_v42  ;;  %v3697_v42 = vld [vmem:[#allocation5 + $0x298] sm:$0xff]  }
  0x49   :  { %2349 = vmatmul.mubr.bf16.vlgmr.msra.gmra.mrb[0].mxu0 %v229_v45  ;;  %v3700_v45 = vld [vmem:[#allocation5 + $0x220] sm:$0xff]  }
  0x4a   :  { %3302 = vmatpush3.bf16.msra.mxu0 %v3651_v46  ;;  %2389 = vmatmul.mubr.bf16.vlgmr.msra.gmra.mrb[0].mxu1 %v231_v50  ;;  %v3701_v46 = vld [vmem:[#allocation5 + $0x2a0] sm:$0xff]   ;;  %v3705_v50 = vld [vmem:[#allocation5 + $0x2a8] sm:$0xff]  }
  0x4b   :  { %3303 = vmatprep.subr.bf16.mxu0 %v3653_v51  ;;  %3324 = vmatpush3.bf16.msra.mxu1 %v3652_v49  ;;  %v3704_v49 = vld [vmem:[#allocation5 + $0x228] sm:$0xff]   ;;  %v3706_v51 = vld [vmem:[#allocation5 + $0x270] sm:$0xff]  }
  0x4c   :  { %3325 = vmatprep.subr.bf16.mxu1 %v3654_v53  ;;  %2428 = vmatprep.mubr.bf16.mxu0 %v234_v25  ;;  %v3708_v53 = vld [vmem:[#allocation5 + $0x230] sm:$0xff]   ;;  %v3735_v25 = vld [vmem:[#allocation5 + $0x368] sm:$0xff]  }
  0x4d   :  { %2468 = vmatprep.mubr.bf16.mxu1 %v236_v30  ;;  %v3740_v30 = vld [vmem:[#allocation5 + $0x3f0] sm:$0xff]  }
  0x4e   :  { %3304 = vmatpush3.bf16.msra.mxu0 %v3655_v54  ;;  %v3709_v54 = vld [vmem:[#allocation5 + $0x2b0] sm:$0xff]  }
  0x4f   :  { %3305 = vmatprep.subr.bf16.mxu0 %v3657_v56  ;;  %3326 = vmatpush3.bf16.msra.mxu1 %v3656_v55  ;;  %v3710_v55 = vld [vmem:[#allocation5 + $0x278] sm:$0xff]  }
  0x50   :  { %3327 = vmatprep.subr.bf16.mxu1 %v3658_v57  ;;  %v3711_v56 = vld [vmem:[#allocation5 + $0x2f8] sm:$0xff]  }
  0x51   :  { %v3712_v57 = vld [vmem:[#allocation5 + $0x238] sm:$0xff]  }
  0x52   :  { %3306 = vmatpush3.bf16.msra.mxu0 %v3659_v58  ;;  %v47_v58 = vld [vmem:[#allocation2 + $0x10] sm:$0xff] }
  0x53   :  { %3307 = vmatprep.subr.bf16.mxu0 %v3661_v60  ;;  %3328 = vmatpush3.bf16.msra.mxu1 %v3660_v59  ;;  %v3713_v59 = vld [vmem:[#allocation5 + $0x2b8] sm:$0xff]   ;;  %v102_v60 = vrot.slane %v47_v58, %v4043_v35 }
  0x54   :  { %3329 = vmatprep.subr.bf16.mxu1 %v3662_v61  ;;  %v95_v61 = vcombine.high %v47_v58, %v47_v58  ;;  %v3758_v58 = vld [vmem:[#allocation5 + $0x410] sm:$0xff]  }
  0x56   :  { %3308 = vmatpush3.bf16.msra.mxu0 %v3663_v62  ;;  %v3715_v62 = vld [vmem:[#allocation5 + $0x340] sm:$0xff]  }
  0x57   :  { %3309 = vmatprep.subr.bf16.mxu0 %v3665_v0  ;;  %3330 = vmatpush3.bf16.msra.mxu1 %v3664_v63  ;;  %v110_v63 = vcombine.high %v102_v60, %v102_v60  ;;  %v109_v0 = vrot.slane %v95_v61, %v4043_v35  ;;  %v3761_v61 = vld [vmem:[#allocation5 + $0x4d8] sm:$0xff]  }
  0x58   :  { %3331 = vmatprep.subr.bf16.mxu1 %v3666_v1  ;;  %v3716_v1 = vld [vmem:[#allocation5 + $0x3c0] sm:$0xff]  }
  0x5a   :  { %3310 = vmatpush3.bf16.msra.mxu0 %v3667_v2  ;;  %v237_v2 = vpack.c.bf16 %v102_v60, %v102_v60  ;;  %v3760_v60 = vld [vmem:[#allocation5 + $0x458] sm:$0xff]  }
  0x5b   :  { %3311 = vmatprep.subr.bf16.mxu0 %v3669_v4  ;;  %3332 = vmatpush3.bf16.msra.mxu1 %v3668_v3  ;;  %v3717_v3 = vld [vmem:[#allocation5 + $0x300] sm:$0xff]   ;;  %v238_v4 = vpack.c.bf16 %v110_v63, %v110_v63  ;;  %v3763_v63 = vld [vmem:[#allocation5 + $0x498] sm:$0xff]  }
  0x5c   :  { %3333 = vmatprep.subr.bf16.mxu1 %v3670_v5  ;;  %v111_v5 = vcombine.high %v109_v0, %v109_v0 }
  0x5e   :  { %3312 = vmatpush3.bf16.msra.mxu0 %v3671_v6  ;;  %v3718_v6 = vld [vmem:[#allocation5 + $0x380] sm:$0xff]  }
  0x5f   :  { %3313 = vmatprep.subr.bf16.mxu0 %v3673_v8  ;;  %3334 = vmatpush3.bf16.msra.mxu1 %v3672_v7  ;;  %v239_v7 = vpack.c.bf16 %v109_v0, %v109_v0  ;;  %v3719_v8 = vld [vmem:[#allocation5 + $0x348] sm:$0xff]   ;;  %v3764_v0 = vld [vmem:[#allocation5 + $0x460] sm:$0xff]  }
  0x60   :  { %3335 = vmatprep.subr.bf16.mxu1 %v3674_v9  ;;  %v240_v9 = vpack.c.bf16 %v111_v5, %v111_v5  ;;  %v3769_v5 = vld [vmem:[#allocation5 + $0x4e8] sm:$0xff]  }
  0x62   :  { %3314 = vmatpush3.bf16.msra.mxu0 %v3675_v10  ;;  %v3720_v10 = vld [vmem:[#allocation5 + $0x3c8] sm:$0xff]  }
  0x63   :  { %3315 = vmatprep.subr.bf16.mxu0 %v3677_v12  ;;  %3336 = vmatpush3.bf16.msra.mxu1 %v3676_v11  ;;  %v3721_v11 = vld [vmem:[#allocation5 + $0x308] sm:$0xff]  }
  0x64   :  { %3337 = vmatprep.subr.bf16.mxu1 %v3678_v13  ;;  %v3722_v12 = vld [vmem:[#allocation5 + $0x388] sm:$0xff]   ;;  %v3723_v13 = vld [vmem:[#allocation5 + $0x350] sm:$0xff]  }
  0x66   :  { %3316 = vmatpush3.bf16.msra.mxu0 %v3679_v14  ;;  %v3724_v14 = vld [vmem:[#allocation5 + $0x3d0] sm:$0xff]  }
  0x67   :  { %3345 = vmatprep.subr.bf16.mxu0 %v3682_v19  ;;  %3338 = vmatpush3.bf16.msra.mxu1 %v3680_v16  ;;  %v3726_v16 = vld [vmem:[#allocation5 + $0x390] sm:$0xff]   ;;  %v3729_v19 = vld [vmem:[#allocation5 + $0x318] sm:$0xff]  }
  0x68   :  { %3367 = vmatprep.subr.bf16.mxu1 %v3683_v22  ;;  %v3732_v22 = vld [vmem:[#allocation5 + $0x3e0] sm:$0xff]  }
  0x69   :  { %2429 = vmatmul.mubr.bf16.vlgmr.msra.gmra.mrb[4].mxu0 %v233_v23  ;;  %v3733_v23 = vld [vmem:[#allocation5 + $0x320] sm:$0xff]  }
  0x6a   :  { %3346 = vmatpush3.bf16.msra.mxu0 %v3684_v24  ;;  %2469 = vmatmul.mubr.bf16.vlgmr.msra.gmra.mrb[4].mxu1 %v235_v28  ;;  %v3734_v24 = vld [vmem:[#allocation5 + $0x3a0] sm:$0xff]   ;;  %v3738_v28 = vld [vmem:[#allocation5 + $0x3a8] sm:$0xff]  }
  0x6b   :  { %3347 = vmatprep.subr.bf16.mxu0 %v3686_v29  ;;  %3368 = vmatpush3.bf16.msra.mxu1 %v3685_v27  ;;  %v3737_v27 = vld [vmem:[#allocation5 + $0x328] sm:$0xff]   ;;  %v3739_v29 = vld [vmem:[#allocation5 + $0x370] sm:$0xff]  }
  0x6c   :  { %3369 = vmatprep.subr.bf16.mxu1 %v3687_v31  ;;  %2508 = vmatprep.mubr.bf16.mxu0 %v238_v4  ;;  %v3741_v31 = vld [vmem:[#allocation5 + $0x330] sm:$0xff]   ;;  %v3768_v4 = vld [vmem:[#allocation5 + $0x468] sm:$0xff]  }
  0x6d   :  { %2548 = vmatprep.mubr.bf16.mxu1 %v240_v9  ;;  %v3773_v9 = vld [vmem:[#allocation5 + $0x4f0] sm:$0xff]  }
  0x6e   :  { %3348 = vmatpush3.bf16.msra.mxu0 %v3688_v32  ;;  %v3742_v32 = vld [vmem:[#allocation5 + $0x3b0] sm:$0xff]  }
  0x6f   :  { %3349 = vmatprep.subr.bf16.mxu0 %v3690_v34  ;;  %3370 = vmatpush3.bf16.msra.mxu1 %v3689_v33  ;;  %v3743_v33 = vld [vmem:[#allocation5 + $0x378] sm:$0xff]  }
  0x70   :  { %3371 = vmatprep.subr.bf16.mxu1 %v3691_v36  ;;  %v3744_v34 = vld [vmem:[#allocation5 + $0x3f8] sm:$0xff]  }
  0x71   :  { %v3745_v36 = vld [vmem:[#allocation5 + $0x338] sm:$0xff]  }
  0x72   :  { %3350 = vmatpush3.bf16.msra.mxu0 %v3692_v37  ;;  %v48_v37 = vld [vmem:[#allocation2 + $0x18] sm:$0xff] }
  0x73   :  { %3351 = vmatprep.subr.bf16.mxu0 %v3694_v39  ;;  %3372 = vmatpush3.bf16.msra.mxu1 %v3693_v38  ;;  %v119_v38 = vrot.slane %v48_v37, %v4043_v35  ;;  %v112_v39 = vcombine.high %v48_v37, %v48_v37  ;;  %v3791_v37 = vld [vmem:[#allocation5 + $0x510] sm:$0xff]  }
  0x74   :  { %3373 = vmatprep.subr.bf16.mxu1 %v3695_v40  ;;  %v3748_v40 = vld [vmem:[#allocation5 + $0x440] sm:$0xff]  }
  0x76   :  { %3352 = vmatpush3.bf16.msra.mxu0 %v3696_v41  ;;  %v3746_v41 = vld [vmem:[#allocation5 + $0x3b8] sm:$0xff]  }
  0x77   :  { %3353 = vmatprep.subr.bf16.mxu0 %v3698_v43  ;;  %3374 = vmatpush3.bf16.msra.mxu1 %v3697_v42  ;;  %v127_v42 = vcombine.high %v119_v38, %v119_v38  ;;  %v126_v43 = vrot.slane %v112_v39, %v4043_v35  ;;  %v3793_v39 = vld [vmem:[#allocation5 + $0x558] sm:$0xff]  }
  0x78   :  { %3375 = vmatprep.subr.bf16.mxu1 %v3699_v44  ;;  %v3749_v44 = vld [vmem:[#allocation5 + $0x4c0] sm:$0xff]  }
  0x7a   :  { %3354 = vmatpush3.bf16.msra.mxu0 %v3700_v45  ;;  %v241_v45 = vpack.c.bf16 %v119_v38, %v119_v38  ;;  %v3792_v38 = vld [vmem:[#allocation5 + $0x590] sm:$0xff]  }
  0x7b   :  { %3355 = vmatprep.subr.bf16.mxu0 %v3702_v47  ;;  %3376 = vmatpush3.bf16.msra.mxu1 %v3701_v46  ;;  %v3750_v46 = vld [vmem:[#allocation5 + $0x400] sm:$0xff]   ;;  %v242_v47 = vpack.c.bf16 %v127_v42, %v127_v42  ;;  %v3796_v42 = vld [vmem:[#allocation5 + $0x598] sm:$0xff]  }
  0x7c   :  { %3377 = vmatprep.subr.bf16.mxu1 %v3703_v48  ;;  %v128_v48 = vcombine.high %v126_v43, %v126_v43 }
  0x7e   :  { %3356 = vmatpush3.bf16.msra.mxu0 %v3704_v49  ;;  %v3751_v49 = vld [vmem:[#allocation5 + $0x480] sm:$0xff]  }
  0x7f   :  { %3357 = vmatprep.subr.bf16.mxu0 %v3706_v51  ;;  %3378 = vmatpush3.bf16.msra.mxu1 %v3705_v50  ;;  %v243_v50 = vpack.c.bf16 %v126_v43, %v126_v43  ;;  %v3752_v51 = vld [vmem:[#allocation5 + $0x448] sm:$0xff]   ;;  %v3797_v43 = vld [vmem:[#allocation5 + $0x560] sm:$0xff]  }
  0x80   :  { %3379 = vmatprep.subr.bf16.mxu1 %v3707_v52  ;;  %v244_v52 = vpack.c.bf16 %v128_v48, %v128_v48  ;;  %v3802_v48 = vld [vmem:[#allocation5 + $0x5e8] sm:$0xff]  }
  0x82   :  { %3358 = vmatpush3.bf16.msra.mxu0 %v3708_v53  ;;  %v3753_v53 = vld [vmem:[#allocation5 + $0x4c8] sm:$0xff]  }
  0x83   :  { %3359 = vmatprep.subr.bf16.mxu0 %v3710_v55  ;;  %3380 = vmatpush3.bf16.msra.mxu1 %v3709_v54  ;;  %v3754_v54 = vld [vmem:[#allocation5 + $0x408] sm:$0xff]  }
  0x84   :  { %3381 = vmatprep.subr.bf16.mxu1 %v3711_v56  ;;  %v3755_v55 = vld [vmem:[#allocation5 + $0x488] sm:$0xff]   ;;  %v3756_v56 = vld [vmem:[#allocation5 + $0x450] sm:$0xff]  }
  0x86   :  { %3360 = vmatpush3.bf16.msra.mxu0 %v3712_v57  ;;  %v3757_v57 = vld [vmem:[#allocation5 + $0x4d0] sm:$0xff]  }
  0x87   :  { %3389 = vmatprep.subr.bf16.mxu0 %v3715_v62  ;;  %3382 = vmatpush3.bf16.msra.mxu1 %v3713_v59  ;;  %v3759_v59 = vld [vmem:[#allocation5 + $0x490] sm:$0xff]   ;;  %v3762_v62 = vld [vmem:[#allocation5 + $0x418] sm:$0xff]  }
  0x88   :  { %3411 = vmatprep.subr.bf16.mxu1 %v3716_v1  ;;  %v3765_v1 = vld [vmem:[#allocation5 + $0x4e0] sm:$0xff]  }
  0x89   :  { %2509 = vmatmul.mubr.bf16.vlgmr.msra.gmra.mrb[8].mxu0 %v237_v2  ;;  %v3766_v2 = vld [vmem:[#allocation5 + $0x420] sm:$0xff]  }
  0x8a   :  { %3390 = vmatpush3.bf16.msra.mxu0 %v3717_v3  ;;  %2549 = vmatmul.mubr.bf16.vlgmr.msra.gmra.mrb[8].mxu1 %v239_v7  ;;  %v3767_v3 = vld [vmem:[#allocation5 + $0x4a0] sm:$0xff]   ;;  %v3771_v7 = vld [vmem:[#allocation5 + $0x4a8] sm:$0xff]  }
  0x8b   :  { %3391 = vmatprep.subr.bf16.mxu0 %v3719_v8  ;;  %3412 = vmatpush3.bf16.msra.mxu1 %v3718_v6  ;;  %v3770_v6 = vld [vmem:[#allocation5 + $0x428] sm:$0xff]   ;;  %v3772_v8 = vld [vmem:[#allocation5 + $0x470] sm:$0xff]  }
  0x8c   :  { %3413 = vmatprep.subr.bf16.mxu1 %v3720_v10  ;;  %2588 = vmatprep.mubr.bf16.mxu0 %v242_v47  ;;  %v3774_v10 = vld [vmem:[#allocation5 + $0x430] sm:$0xff]   ;;  %v3801_v47 = vld [vmem:[#allocation5 + $0x568] sm:$0xff]  }
  0x8d   :  { %2628 = vmatprep.mubr.bf16.mxu1 %v244_v52  ;;  %v3806_v52 = vld [vmem:[#allocation5 + $0x5f0] sm:$0xff]  }
  0x8e   :  { %3392 = vmatpush3.bf16.msra.mxu0 %v3721_v11  ;;  %v3775_v11 = vld [vmem:[#allocation5 + $0x4b0] sm:$0xff]  }
  0x8f   :  { %3393 = vmatprep.subr.bf16.mxu0 %v3723_v13  ;;  %3414 = vmatpush3.bf16.msra.mxu1 %v3722_v12  ;;  %v3776_v12 = vld [vmem:[#allocation5 + $0x478] sm:$0xff]  }
  0x90   :  { %3415 = vmatprep.subr.bf16.mxu1 %v3724_v14  ;;  %v3777_v13 = vld [vmem:[#allocation5 + $0x4f8] sm:$0xff]  }
  0x91   :  { %v3778_v14 = vld [vmem:[#allocation5 + $0x438] sm:$0xff]  }
  0x92   :  { %3394 = vmatpush3.bf16.msra.mxu0 %v3725_v15  ;;  %v49_v15 = vld [vmem:[#allocation2 + $0x20] sm:$0xff] }
  0x93   :  { %3395 = vmatprep.subr.bf16.mxu0 %v3727_v17  ;;  %3416 = vmatpush3.bf16.msra.mxu1 %v3726_v16  ;;  %v3779_v16 = vld [vmem:[#allocation5 + $0x4b8] sm:$0xff]   ;;  %v136_v17 = vrot.slane %v49_v15, %v4043_v35 }
  0x94   :  { %3417 = vmatprep.subr.bf16.mxu1 %v3728_v18  ;;  %v129_v18 = vcombine.high %v49_v15, %v49_v15  ;;  %v3824_v15 = vld [vmem:[#allocation5 + $0x610] sm:$0xff]  }
  0x96   :  { %3396 = vmatpush3.bf16.msra.mxu0 %v3729_v19  ;;  %v3781_v19 = vld [vmem:[#allocation5 + $0x540] sm:$0xff]  }
  0x97   :  { %3397 = vmatprep.subr.bf16.mxu0 %v3731_v21  ;;  %3418 = vmatpush3.bf16.msra.mxu1 %v3730_v20  ;;  %v144_v20 = vcombine.high %v136_v17, %v136_v17  ;;  %v143_v21 = vrot.slane %v129_v18, %v4043_v35  ;;  %v3827_v18 = vld [vmem:[#allocation5 + $0x6d8] sm:$0xff]  }
  0x98   :  { %3419 = vmatprep.subr.bf16.mxu1 %v3732_v22  ;;  %v3782_v22 = vld [vmem:[#allocation5 + $0x5c0] sm:$0xff]  }
  0x9a   :  { %3398 = vmatpush3.bf16.msra.mxu0 %v3733_v23  ;;  %v245_v23 = vpack.c.bf16 %v136_v17, %v136_v17  ;;  %v3826_v17 = vld [vmem:[#allocation5 + $0x658] sm:$0xff]  }
  0x9b   :  { %3399 = vmatprep.subr.bf16.mxu0 %v3735_v25  ;;  %3420 = vmatpush3.bf16.msra.mxu1 %v3734_v24  ;;  %v3783_v24 = vld [vmem:[#allocation5 + $0x500] sm:$0xff]   ;;  %v246_v25 = vpack.c.bf16 %v144_v20, %v144_v20  ;;  %v3829_v20 = vld [vmem:[#allocation5 + $0x698] sm:$0xff]  }
  0x9c   :  { %3421 = vmatprep.subr.bf16.mxu1 %v3736_v26  ;;  %v145_v26 = vcombine.high %v143_v21, %v143_v21 }
  0x9e   :  { %3400 = vmatpush3.bf16.msra.mxu0 %v3737_v27  ;;  %v3784_v27 = vld [vmem:[#allocation5 + $0x580] sm:$0xff]  }
  0x9f   :  { %3401 = vmatprep.subr.bf16.mxu0 %v3739_v29  ;;  %3422 = vmatpush3.bf16.msra.mxu1 %v3738_v28  ;;  %v247_v28 = vpack.c.bf16 %v143_v21, %v143_v21  ;;  %v3785_v29 = vld [vmem:[#allocation5 + $0x548] sm:$0xff]   ;;  %v3830_v21 = vld [vmem:[#allocation5 + $0x660] sm:$0xff]  }
  0xa0   :  { %3423 = vmatprep.subr.bf16.mxu1 %v3740_v30  ;;  %v248_v30 = vpack.c.bf16 %v145_v26, %v145_v26  ;;  %v3835_v26 = vld [vmem:[#allocation5 + $0x6e8] sm:$0xff]  }
  0xa2   :  { %3402 = vmatpush3.bf16.msra.mxu0 %v3741_v31  ;;  %v3786_v31 = vld [vmem:[#allocation5 + $0x5c8] sm:$0xff]  }
  0xa3   :  { %3403 = vmatprep.subr.bf16.mxu0 %v3743_v33  ;;  %3424 = vmatpush3.bf16.msra.mxu1 %v3742_v32  ;;  %v3787_v32 = vld [vmem:[#allocation5 + $0x508] sm:$0xff]  }
  0xa4   :  { %3425 = vmatprep.subr.bf16.mxu1 %v3744_v34  ;;  %v3788_v33 = vld [vmem:[#allocation5 + $0x588] sm:$0xff]   ;;  %v3789_v34 = vld [vmem:[#allocation5 + $0x550] sm:$0xff]  }
  0xa6   :  { %3404 = vmatpush3.bf16.msra.mxu0 %v3745_v36  ;;  %v3790_v36 = vld [vmem:[#allocation5 + $0x5d0] sm:$0xff]  }
  0xa7   :  { %3433 = vmatprep.subr.bf16.mxu0 %v3748_v40  ;;  %3426 = vmatpush3.bf16.msra.mxu1 %v3746_v41  ;;  %v3794_v40 = vld [vmem:[#allocation5 + $0x5d8] sm:$0xff]  }
  0xa8   :  { %3455 = vmatprep.subr.bf16.mxu1 %v3749_v44  ;;  %v3795_v41 = vld [vmem:[#allocation5 + $0x518] sm:$0xff]   ;;  %v3798_v44 = vld [vmem:[#allocation5 + $0x5e0] sm:$0xff]  }
  0xa9   :  { %2589 = vmatmul.mubr.bf16.vlgmr.msra.gmra.mrb[12].mxu0 %v241_v45  ;;  %v3799_v45 = vld [vmem:[#allocation5 + $0x520] sm:$0xff]  }
  0xaa   :  { %3434 = vmatpush3.bf16.msra.mxu0 %v3750_v46  ;;  %2629 = vmatmul.mubr.bf16.vlgmr.msra.gmra.mrb[12].mxu1 %v243_v50  ;;  %v3800_v46 = vld [vmem:[#allocation5 + $0x5a0] sm:$0xff]   ;;  %v3804_v50 = vld [vmem:[#allocation5 + $0x5a8] sm:$0xff]  }
  0xab   :  { %3435 = vmatprep.subr.bf16.mxu0 %v3752_v51  ;;  %3456 = vmatpush3.bf16.msra.mxu1 %v3751_v49  ;;  %v3803_v49 = vld [vmem:[#allocation5 + $0x528] sm:$0xff]   ;;  %v3805_v51 = vld [vmem:[#allocation5 + $0x570] sm:$0xff]  }
  0xac   :  { %3457 = vmatprep.subr.bf16.mxu1 %v3753_v53  ;;  %2668 = vmatprep.mubr.bf16.mxu0 %v246_v25  ;;  %v3807_v53 = vld [vmem:[#allocation5 + $0x530] sm:$0xff]   ;;  %v3834_v25 = vld [vmem:[#allocation5 + $0x668] sm:$0xff]  }
  0xad   :  { %2708 = vmatprep.mubr.bf16.mxu1 %v248_v30  ;;  %v3839_v30 = vld [vmem:[#allocation5 + $0x6f0] sm:$0xff]  }
  0xae   :  { %3436 = vmatpush3.bf16.msra.mxu0 %v3754_v54  ;;  %v3808_v54 = vld [vmem:[#allocation5 + $0x5b0] sm:$0xff]  }
  0xaf   :  { %3437 = vmatprep.subr.bf16.mxu0 %v3756_v56  ;;  %3458 = vmatpush3.bf16.msra.mxu1 %v3755_v55  ;;  %v3809_v55 = vld [vmem:[#allocation5 + $0x578] sm:$0xff]  }
  0xb0   :  { %3459 = vmatprep.subr.bf16.mxu1 %v3757_v57  ;;  %v3810_v56 = vld [vmem:[#allocation5 + $0x5f8] sm:$0xff]  }
  0xb1   :  { %v3811_v57 = vld [vmem:[#allocation5 + $0x538] sm:$0xff]  }
  0xb2   :  { %3438 = vmatpush3.bf16.msra.mxu0 %v3758_v58  ;;  %v50_v58 = vld [vmem:[#allocation2 + $0x28] sm:$0xff] }
  0xb3   :  { %3439 = vmatprep.subr.bf16.mxu0 %v3760_v60  ;;  %3460 = vmatpush3.bf16.msra.mxu1 %v3759_v59  ;;  %v3812_v59 = vld [vmem:[#allocation5 + $0x5b8] sm:$0xff]   ;;  %v153_v60 = vrot.slane %v50_v58, %v4043_v35 }
  0xb4   :  { %3461 = vmatprep.subr.bf16.mxu1 %v3761_v61  ;;  %v146_v61 = vcombine.high %v50_v58, %v50_v58  ;;  %v3857_v58 = vld [vmem:[#allocation5 + $0x710] sm:$0xff]  }
  0xb6   :  { %3440 = vmatpush3.bf16.msra.mxu0 %v3762_v62  ;;  %v3814_v62 = vld [vmem:[#allocation5 + $0x640] sm:$0xff]  }
  0xb7   :  { %3441 = vmatprep.subr.bf16.mxu0 %v3764_v0  ;;  %3462 = vmatpush3.bf16.msra.mxu1 %v3763_v63  ;;  %v161_v63 = vcombine.high %v153_v60, %v153_v60  ;;  %v160_v0 = vrot.slane %v146_v61, %v4043_v35  ;;  %v3860_v61 = vld [vmem:[#allocation5 + $0x7d8] sm:$0xff]  }
  0xb8   :  { %3463 = vmatprep.subr.bf16.mxu1 %v3765_v1  ;;  %v3815_v1 = vld [vmem:[#allocation5 + $0x6c0] sm:$0xff]  }
  0xba   :  { %3442 = vmatpush3.bf16.msra.mxu0 %v3766_v2  ;;  %v249_v2 = vpack.c.bf16 %v153_v60, %v153_v60  ;;  %v3858_v60 = vld [vmem:[#allocation5 + $0x790] sm:$0xff]  }
  0xbb   :  { %3443 = vmatprep.subr.bf16.mxu0 %v3768_v4  ;;  %3464 = vmatpush3.bf16.msra.mxu1 %v3767_v3  ;;  %v3816_v3 = vld [vmem:[#allocation5 + $0x600] sm:$0xff]   ;;  %v250_v4 = vpack.c.bf16 %v161_v63, %v161_v63 }
  0xbc   :  { %3465 = vmatprep.subr.bf16.mxu1 %v3769_v5  ;;  %v162_v5 = vcombine.high %v160_v0, %v160_v0  ;;  %v3863_v63 = vld [vmem:[#allocation5 + $0x760] sm:$0xff]  }
  0xbe   :  { %3444 = vmatpush3.bf16.msra.mxu0 %v3770_v6  ;;  %v3817_v6 = vld [vmem:[#allocation5 + $0x680] sm:$0xff]  }
  0xbf   :  { %3445 = vmatprep.subr.bf16.mxu0 %v3772_v8  ;;  %3466 = vmatpush3.bf16.msra.mxu1 %v3771_v7  ;;  %v251_v7 = vpack.c.bf16 %v160_v0, %v160_v0  ;;  %v3818_v8 = vld [vmem:[#allocation5 + $0x648] sm:$0xff]   ;;  %v3862_v0 = vld [vmem:[#allocation5 + $0x798] sm:$0xff]  }
  0xc0   :  { %3467 = vmatprep.subr.bf16.mxu1 %v3773_v9  ;;  %v252_v9 = vpack.c.bf16 %v162_v5, %v162_v5  ;;  %v3000_v5 = vld [vmem:[%s4090_s2] ss:$0 sm:$0xff]  ;;  %s3985_s2 = smov [#allocation7]  }
  0xc1   :  { %s2976_s15 = sshll.u32 %s3985_s2, 4  ;;  %s2977_s15 = int_to_ptr.vmem [resolvable:$true] %s2976_s15 }
  0xc2   :  { %3446 = vmatpush3.bf16.msra.mxu0 %v3774_v10  ;;  %v3819_v10 = vld [vmem:[#allocation5 + $0x6c8] sm:$0xff]   ;;  %s3928_s16 = scalar_lea.vmem %s2977_s15, 32  ;;  %p3933_p3 = scmp.lt.s32.totalorder %s2977_s15, %s2977_s15 }
  0xc3   :  { %3447 = vmatprep.subr.bf16.mxu0 %v3776_v12  ;;  %3468 = vmatpush3.bf16.msra.mxu1 %v3775_v11  ;;  %v3820_v11 = vld [vmem:[#allocation5 + $0x608] sm:$0xff]   ;;  %p3929_p2 = scmp.ne.s32.totalorder %s2977_s15, %s3928_s16  ;;  %p3934_p4 = scmp.lt.s32.totalorder %s3928_s16, %s3928_s16 }
  0xc4   :  { %3469 = vmatprep.subr.bf16.mxu1 %v3777_v13  ;;  %v3821_v12 = vld [vmem:[#allocation5 + $0x688] sm:$0xff]   ;;  %v3822_v13 = vld [vmem:[#allocation5 + $0x650] sm:$0xff]  }
  0xc5   :  { %p3935_p5 = por %p3934_p4, %p3933_p3 }
  0xc6   :  { %3448 = vmatpush3.bf16.msra.mxu0 %v3778_v14  ;;  %v3823_v14 = vld [vmem:[#allocation5 + $0x6d0] sm:$0xff]  }
  0xc7   :  { %3477 = vmatprep.subr.bf16.mxu0 %v3781_v19  ;;  %3470 = vmatpush3.bf16.msra.mxu1 %v3779_v16  ;;  %v3825_v16 = vld [vmem:[#allocation5 + $0x690] sm:$0xff]   ;;  %v3828_v19 = vld [vmem:[#allocation5 + $0x618] sm:$0xff]   ;;  %p3936_p6 = pnand %p3935_p5, %p3929_p2 }
  0xc8   :  { %3499 = vmatprep.subr.bf16.mxu1 %v3782_v22  ;;  %v3831_v22 = vld [vmem:[#allocation5 + $0x6e0] sm:$0xff]  }
  0xc9   :  { %2669 = vmatmul.mubr.bf16.vlgmr.msra.gmra.mrb[16].mxu0 %v245_v23  ;;  %v3832_v23 = vld [vmem:[#allocation5 + $0x620] sm:$0xff]  }
  0xca   :  { %3478 = vmatpush3.bf16.msra.mxu0 %v3783_v24  ;;  %2709 = vmatmul.mubr.bf16.vlgmr.msra.gmra.mrb[16].mxu1 %v247_v28  ;;  %v3833_v24 = vld [vmem:[#allocation5 + $0x6a0] sm:$0xff]   ;;  %v3837_v28 = vld [vmem:[#allocation5 + $0x6a8] sm:$0xff]  }
  0xcb   :  { %3479 = vmatprep.subr.bf16.mxu0 %v3785_v29  ;;  %3500 = vmatpush3.bf16.msra.mxu1 %v3784_v27  ;;  %v3836_v27 = vld [vmem:[#allocation5 + $0x628] sm:$0xff]   ;;  %v3838_v29 = vld [vmem:[#allocation5 + $0x670] sm:$0xff]  }
  0xcc   :  { %3501 = vmatprep.subr.bf16.mxu1 %v3786_v31  ;;  %2748 = vmatprep.mubr.bf16.mxu0 %v250_v4  ;;  %v3840_v31 = vld [vmem:[#allocation5 + $0x630] sm:$0xff]   ;;  %v3866_v4 = vld [vmem:[#allocation5 + $0x7a0] sm:$0xff]  }
  0xcd   :  { %2788 = vmatprep.mubr.bf16.mxu1 %v252_v9 }
  0xce   :  { %3480 = vmatpush3.bf16.msra.mxu0 %v3787_v32  ;;  %v3841_v32 = vld [vmem:[#allocation5 + $0x6b0] sm:$0xff]  }
  0xcf   :  { %3481 = vmatprep.subr.bf16.mxu0 %v3789_v34  ;;  %3502 = vmatpush3.bf16.msra.mxu1 %v3788_v33  ;;  %v3842_v33 = vld [vmem:[#allocation5 + $0x678] sm:$0xff]  }
  0xd0   :  { %3503 = vmatprep.subr.bf16.mxu1 %v3790_v36  ;;  %v3843_v34 = vld [vmem:[#allocation5 + $0x6f8] sm:$0xff]  }
  0xd1   :  { %v3844_v36 = vld [vmem:[#allocation5 + $0x638] sm:$0xff]  }
  0xd2   :  { %3482 = vmatpush3.bf16.msra.mxu0 %v3791_v37  ;;  %v51_v37 = vld [vmem:[#allocation2 + $0x30] sm:$0xff] }
  0xd3   :  { %3483 = vmatprep.subr.bf16.mxu0 %v3793_v39  ;;  %3504 = vmatpush3.bf16.msra.mxu1 %v3792_v38  ;;  %v170_v38 = vrot.slane %v51_v37, %v4043_v35  ;;  %v163_v39 = vcombine.high %v51_v37, %v51_v37 }
  0xd4   :  { %3505 = vmatprep.subr.bf16.mxu1 %v3794_v40  ;;  %v3847_v40 = vld [vmem:[#allocation5 + $0x740] sm:$0xff]  }
  0xd6   :  { %3484 = vmatpush3.bf16.msra.mxu0 %v3795_v41  ;;  %v3845_v41 = vld [vmem:[#allocation5 + $0x6b8] sm:$0xff]  }
  0xd7   :  { %3485 = vmatprep.subr.bf16.mxu0 %v3797_v43  ;;  %3506 = vmatpush3.bf16.msra.mxu1 %v3796_v42  ;;  %v178_v42 = vcombine.high %v170_v38, %v170_v38  ;;  %v177_v43 = vrot.slane %v163_v39, %v4043_v35 }
  0xd8   :  { %3507 = vmatprep.subr.bf16.mxu1 %v3798_v44  ;;  %v3848_v44 = vld [vmem:[#allocation5 + $0x7c0] sm:$0xff]  }
  0xda   :  { %3486 = vmatpush3.bf16.msra.mxu0 %v3799_v45  ;;  %v253_v45 = vpack.c.bf16 %v170_v38, %v170_v38 }
  0xdb   :  { %3487 = vmatprep.subr.bf16.mxu0 %v3801_v47  ;;  %3508 = vmatpush3.bf16.msra.mxu1 %v3800_v46  ;;  %v254_v46 = vpack.c.bf16 %v178_v42, %v178_v42  ;;  %v179_v47 = vcombine.high %v177_v43, %v177_v43 }
  0xdc   :  { %3509 = vmatprep.subr.bf16.mxu1 %v3802_v48  ;;  %v3849_v48 = vld [vmem:[#allocation5 + $0x700] sm:$0xff]  }
  0xde   :  { %3488 = vmatpush3.bf16.msra.mxu0 %v3803_v49  ;;  %v255_v49 = vpack.c.bf16 %v177_v43, %v177_v43 }
  0xdf   :  { %3489 = vmatprep.subr.bf16.mxu0 %v3805_v51  ;;  %3510 = vmatpush3.bf16.msra.mxu1 %v3804_v50  ;;  %v3851_v50 = vld [vmem:[#allocation5 + $0x748] sm:$0xff]   ;;  %v256_v51 = vpack.c.bf16 %v179_v47, %v179_v47 }
  0xe0   :  { %3511 = vmatprep.subr.bf16.mxu1 %v3806_v52  ;;  %v3850_v52 = vld [vmem:[#allocation5 + $0x780] sm:$0xff]  }
  0xe2   :  { %3490 = vmatpush3.bf16.msra.mxu0 %v3807_v53  ;;  %v3852_v53 = vld [vmem:[#allocation5 + $0x7c8] sm:$0xff]  }
  0xe3   :  { %3491 = vmatprep.subr.bf16.mxu0 %v3809_v55  ;;  %3512 = vmatpush3.bf16.msra.mxu1 %v3808_v54  ;;  %v3853_v54 = vld [vmem:[#allocation5 + $0x708] sm:$0xff]   ;;  %v3855_v55 = vld [vmem:[#allocation5 + $0x750] sm:$0xff]  }
  0xe4   :  { %3513 = vmatprep.subr.bf16.mxu1 %v3810_v56  ;;  %v3854_v56 = vld [vmem:[#allocation5 + $0x788] sm:$0xff]  }
  0xe6   :  { %3492 = vmatpush3.bf16.msra.mxu0 %v3811_v57  ;;  %v3856_v57 = vld [vmem:[#allocation5 + $0x7d0] sm:$0xff]  }
  0xe7   :  { %3521 = vmatprep.subr.bf16.mxu0 %v3814_v62  ;;  %3514 = vmatpush3.bf16.msra.mxu1 %v3812_v59  ;;  %v3859_v59 = vld [vmem:[#allocation5 + $0x758] sm:$0xff]  }
  0xe8   :  { %3543 = vmatprep.subr.bf16.mxu1 %v3815_v1  ;;  %v3861_v62 = vld [vmem:[#allocation5 + $0x718] sm:$0xff]   ;;  %v3864_v1 = vld [vmem:[#allocation5 + $0x7e0] sm:$0xff]  }
  0xe9   :  { %2749 = vmatmul.mubr.bf16.vlgmr.msra.gmra.mrb[20].mxu0 %v249_v2  ;;  %v3865_v2 = vld [vmem:[#allocation5 + $0x720] sm:$0xff]  }
  0xea   :  { %3522 = vmatpush3.bf16.msra.mxu0 %v3816_v3  ;;  %2789 = vmatmul.mubr.bf16.vlgmr.msra.gmra.mrb[20].mxu1 %v251_v7  ;;  %v3867_v3 = vld [vmem:[#allocation5 + $0x768] sm:$0xff]  }
  0xeb   :  { %3523 = vmatprep.subr.bf16.mxu0 %v3818_v8  ;;  %3544 = vmatpush3.bf16.msra.mxu1 %v3817_v6  ;;  %v3868_v6 = vld [vmem:[#allocation5 + $0x7e8] sm:$0xff]  }
  0xec   :  { %3545 = vmatprep.subr.bf16.mxu1 %v3819_v10  ;;  %2828 = vmatprep.mubr.bf16.mxu0 %v254_v46  ;;  %v3869_v8 = vld [vmem:[#allocation5 + $0x728] sm:$0xff]   ;;  %v3871_v10 = vld [vmem:[#allocation5 + $0x770] sm:$0xff]  }
  0xed   :  { %2868 = vmatprep.mubr.bf16.mxu1 %v256_v51 }
  0xee   :  { %3524 = vmatpush3.bf16.msra.mxu0 %v3820_v11 }
  0xef   :  { %3525 = vmatprep.subr.bf16.mxu0 %v3822_v13  ;;  %3546 = vmatpush3.bf16.msra.mxu1 %v3821_v12 }
  0xf0   :  { %3547 = vmatprep.subr.bf16.mxu1 %v3823_v14  ;;  %v3870_v14 = vld [vmem:[#allocation5 + $0x7a8] sm:$0xff]  }
  0xf2   :  { %3526 = vmatpush3.bf16.msra.mxu0 %v3824_v15  ;;  %v3872_v15 = vld [vmem:[#allocation5 + $0x7f0] sm:$0xff]  }
  0xf3   :  { %3527 = vmatprep.subr.bf16.mxu0 %v3826_v17  ;;  %3548 = vmatpush3.bf16.msra.mxu1 %v3825_v16 }
  0xf4   :  { %3549 = vmatprep.subr.bf16.mxu1 %v3827_v18 }
  0xf6   :  { %3528 = vmatpush3.bf16.msra.mxu0 %v3828_v19 }
  0xf7   :  { %3529 = vmatprep.subr.bf16.mxu0 %v3830_v21  ;;  %3550 = vmatpush3.bf16.msra.mxu1 %v3829_v20  ;;  %v3873_v21 = vld [vmem:[#allocation5 + $0x730] sm:$0xff]  }
  0xf8   :  { %3551 = vmatprep.subr.bf16.mxu1 %v3831_v22 }
  0xfa   :  { %3530 = vmatpush3.bf16.msra.mxu0 %v3832_v23  ;;  %v3875_v23 = vld [vmem:[#allocation5 + $0x778] sm:$0xff]  }
  0xfb   :  { %3531 = vmatprep.subr.bf16.mxu0 %v3834_v25  ;;  %3552 = vmatpush3.bf16.msra.mxu1 %v3833_v24  ;;  %v3874_v25 = vld [vmem:[#allocation5 + $0x7b0] sm:$0xff]  }
  0xfc   :  { %3553 = vmatprep.subr.bf16.mxu1 %v3835_v26  ;;  %v3876_v26 = vld [vmem:[#allocation5 + $0x7f8] sm:$0xff]  }
  0xfe   :  { %3532 = vmatpush3.bf16.msra.mxu0 %v3836_v27  ;;  %v3877_v27 = vld [vmem:[#allocation5 + $0x738] sm:$0xff]  }
  0xff   :  { %3533 = vmatprep.subr.bf16.mxu0 %v3838_v29  ;;  %3554 = vmatpush3.bf16.msra.mxu1 %v3837_v28  ;;  %v52_v28 = vld [vmem:[#allocation2 + $0x38] sm:$0xff] }
 0x100   :  { %3555 = vmatprep.subr.bf16.mxu1 %v3839_v30  ;;  %v187_v29 = vrot.slane %v52_v28, %v4043_v35  ;;  %v180_v30 = vcombine.high %v52_v28, %v52_v28 }
 0x102   :  { %3534 = vmatpush3.bf16.msra.mxu0 %v3840_v31  ;;  %v3878_v31 = vld [vmem:[#allocation5 + $0x7b8] sm:$0xff]  }
 0x103   :  { %3535 = vmatprep.subr.bf16.mxu0 %v3842_v33  ;;  %3556 = vmatpush3.bf16.msra.mxu1 %v3841_v32  ;;  %v195_v32 = vcombine.high %v187_v29, %v187_v29  ;;  %v194_v33 = vrot.slane %v180_v30, %v4043_v35 }
 0x104   :  { %3557 = vmatprep.subr.bf16.mxu1 %v3843_v34  ;;  %v257_v34 = vpack.c.bf16 %v187_v29, %v187_v29 }
 0x105   :  { %v196_v37 = vcombine.high %v194_v33, %v194_v33  ;;  %v259_v38 = vpack.c.bf16 %v194_v33, %v194_v33 }
 0x106   :  { %3536 = vmatpush3.bf16.msra.mxu0 %v3844_v36  ;;  %v258_v36 = vpack.c.bf16 %v195_v32, %v195_v32 }
 0x107   :  { %3565 = vmatprep.subr.bf16.mxu0 %v3847_v40  ;;  %3558 = vmatpush3.bf16.msra.mxu1 %v3845_v41  ;;  %v260_v39 = vpack.c.bf16 %v196_v37, %v196_v37 }
 0x108   :  { %3587 = vmatprep.subr.bf16.mxu1 %v3848_v44 }
 0x109   :  { %2829 = vmatmul.mubr.bf16.vlgmr.msra.gmra.mrb[24].mxu0 %v253_v45 }
 0x10a   :  { %3566 = vmatpush3.bf16.msra.mxu0 %v3849_v48  ;;  %2869 = vmatmul.mubr.bf16.vlgmr.msra.gmra.mrb[24].mxu1 %v255_v49 }
 0x10b   :  { %3567 = vmatprep.subr.bf16.mxu0 %v3851_v50  ;;  %3588 = vmatpush3.bf16.msra.mxu1 %v3850_v52 }
 0x10c   :  { %3589 = vmatprep.subr.bf16.mxu1 %v3852_v53  ;;  %2908 = vmatprep.mubr.bf16.mxu0 %v258_v36 }
 0x10d   :  { %2948 = vmatprep.mubr.bf16.mxu1 %v260_v39 }
 0x10e   :  { %3568 = vmatpush3.bf16.msra.mxu0 %v3853_v54 }
 0x10f   :  { %3569 = vmatprep.subr.bf16.mxu0 %v3855_v55  ;;  %3590 = vmatpush3.bf16.msra.mxu1 %v3854_v56 }
 0x110   :  { %3591 = vmatprep.subr.bf16.mxu1 %v3856_v57 }
 0x112   :  { %3570 = vmatpush3.bf16.msra.mxu0 %v3857_v58 }
 0x113   :  { %3571 = vmatprep.subr.bf16.mxu0 %v3859_v59  ;;  %3592 = vmatpush3.bf16.msra.mxu1 %v3858_v60 }
 0x114   :  { %3593 = vmatprep.subr.bf16.mxu1 %v3860_v61 }
 0x116   :  { %3572 = vmatpush3.bf16.msra.mxu0 %v3861_v62 }
 0x117   :  { %3573 = vmatprep.subr.bf16.mxu0 %v3863_v63  ;;  %3594 = vmatpush3.bf16.msra.mxu1 %v3862_v0 }
 0x118   :  { %3595 = vmatprep.subr.bf16.mxu1 %v3864_v1 }
 0x11a   :  { %3574 = vmatpush3.bf16.msra.mxu0 %v3865_v2 }
 0x11b   :  { %3575 = vmatprep.subr.bf16.mxu0 %v3867_v3  ;;  %3596 = vmatpush3.bf16.msra.mxu1 %v3866_v4 }
 0x11c   :  { %v3273_v7 = vpop.f32.mrb[0].mxu0  ;;  %3597 = vmatprep.subr.bf16.mxu1 %v3868_v6 }
 0x11d   :  { %v3274_v9 = vpop.f32.mrb[1].mxu0  ;;  %v3295_v11 = vpop.f32.mrb[0].mxu1 }
 0x11e   :  { %v3275_v12 = vadd.f32 %v3274_v9, %v3273_v7  ;;  %v3276_v13 = vpop.f32.mrb[2].mxu0  ;;  %v3296_v16 = vpop.f32.mrb[1].mxu1  ;;  %3576 = vmatpush3.bf16.msra.mxu0 %v3869_v8 }
 0x11f   :  { %v3277_v17 = vpop.f32.mrb[3].mxu0  ;;  %v3297_v19 = vadd.f32 %v3296_v16, %v3295_v11  ;;  %v3298_v20 = vpop.f32.mrb[2].mxu1  ;;  %3577 = vmatprep.subr.bf16.mxu0 %v3871_v10  ;;  %3598 = vmatpush3.bf16.msra.mxu1 %v3870_v14 }
 0x120   :  { %v2351_v18 = vadd.f32 %v3275_v12, %v3000_v5  ;;  %v3299_v22 = vpop.f32.mrb[3].mxu1  ;;  %3599 = vmatprep.subr.bf16.mxu1 %v3872_v15 }
 0x122   :  { %v2391_v24 = vadd.f32 %v3297_v19, %v2351_v18  ;;  %3578 = vmatpush3.bf16.msra.mxu0 %v3873_v21 }
 0x123   :  { %3579 = vmatprep.subr.bf16.mxu0 %v3875_v23  ;;  %3600 = vmatpush3.bf16.msra.mxu1 %v3874_v25 }
 0x124   :  { %3601 = vmatprep.subr.bf16.mxu1 %v3876_v26 }
 0x126   :  { %3580 = vmatpush3.bf16.msra.mxu0 %v3877_v27 }
 0x127   :  { %3602 = vmatpush3.bf16.msra.mxu1 %v3878_v31 }
 0x129   :  { %2909 = vmatmul.mubr.bf16.vlgmr.msra.gmra.mrb[28].mxu0 %v257_v34 }
 0x12a   :  { %2949 = vmatmul.mubr.bf16.vlgmr.msra.gmra.mrb[28].mxu1 %v259_v38 }
 0x13c   :  { %v3317_v40 = vpop.f32.mrb[4].mxu0 }
 0x13d   :  { %v3318_v41 = vpop.f32.mrb[5].mxu0  ;;  %v3339_v42 = vpop.f32.mrb[4].mxu1 }
 0x13e   :  { %v3319_v43 = vadd.f32 %v3318_v41, %v3317_v40  ;;  %v3320_v44 = vpop.f32.mrb[6].mxu0  ;;  %v3340_v45 = vpop.f32.mrb[5].mxu1 }
 0x13f   :  { %v3321_v46 = vpop.f32.mrb[7].mxu0  ;;  %v3341_v35 = vadd.f32 %v3340_v45, %v3339_v42  ;;  %v3342_v48 = vpop.f32.mrb[6].mxu1 }
 0x140   :  { %v2431_v47 = vadd.f32 %v3319_v43, %v2391_v24  ;;  %v3343_v49 = vpop.f32.mrb[7].mxu1 }
 0x142   :  { %v2471_v50 = vadd.f32 %v3341_v35, %v2431_v47 }
 0x15c   :  { %v3361_v51 = vpop.f32.mrb[8].mxu0 }
 0x15d   :  { %v3362_v52 = vpop.f32.mrb[9].mxu0  ;;  %v3383_v53 = vpop.f32.mrb[8].mxu1 }
 0x15e   :  { %v3363_v54 = vadd.f32 %v3362_v52, %v3361_v51  ;;  %v3364_v55 = vpop.f32.mrb[10].mxu0  ;;  %v3384_v56 = vpop.f32.mrb[9].mxu1 }
 0x15f   :  { %v3365_v57 = vpop.f32.mrb[11].mxu0  ;;  %v3385_v59 = vadd.f32 %v3384_v56, %v3383_v53  ;;  %v3386_v60 = vpop.f32.mrb[10].mxu1 }
 0x160   :  { %v2511_v58 = vadd.f32 %v3363_v54, %v2471_v50  ;;  %v3387_v61 = vpop.f32.mrb[11].mxu1 }
 0x162   :  { %v2551_v62 = vadd.f32 %v3385_v59, %v2511_v58 }
 0x17c   :  { %v3405_v63 = vpop.f32.mrb[12].mxu0 }
 0x17d   :  { %v3406_v0 = vpop.f32.mrb[13].mxu0  ;;  %v3427_v1 = vpop.f32.mrb[12].mxu1 }
 0x17e   :  { %v3407_v2 = vadd.f32 %v3406_v0, %v3405_v63  ;;  %v3408_v3 = vpop.f32.mrb[14].mxu0  ;;  %v3428_v4 = vpop.f32.mrb[13].mxu1 }
 0x17f   :  { %v3409_v5 = vpop.f32.mrb[15].mxu0  ;;  %v3429_v7 = vadd.f32 %v3428_v4, %v3427_v1  ;;  %v3430_v8 = vpop.f32.mrb[14].mxu1 }
 0x180   :  { %v2591_v6 = vadd.f32 %v3407_v2, %v2551_v62  ;;  %v3431_v9 = vpop.f32.mrb[15].mxu1 }
 0x182   :  { %v2631_v10 = vadd.f32 %v3429_v7, %v2591_v6 }
 0x19c   :  { %v3449_v11 = vpop.f32.mrb[16].mxu0 }
 0x19d   :  { %v3450_v12 = vpop.f32.mrb[17].mxu0  ;;  %v3471_v13 = vpop.f32.mrb[16].mxu1 }
 0x19e   :  { %v3451_v14 = vadd.f32 %v3450_v12, %v3449_v11  ;;  %v3452_v15 = vpop.f32.mrb[18].mxu0  ;;  %v3472_v16 = vpop.f32.mrb[17].mxu1 }
 0x19f   :  { %v3453_v17 = vpop.f32.mrb[19].mxu0  ;;  %v3473_v19 = vadd.f32 %v3472_v16, %v3471_v13  ;;  %v3474_v20 = vpop.f32.mrb[18].mxu1 }
 0x1a0   :  { %v2671_v18 = vadd.f32 %v3451_v14, %v2631_v10  ;;  %v3475_v21 = vpop.f32.mrb[19].mxu1 }
 0x1a2   :  { %v2711_v22 = vadd.f32 %v3473_v19, %v2671_v18 }
 0x1bc   :  { %v3493_v23 = vpop.f32.mrb[20].mxu0 }
 0x1bd   :  { %v3494_v24 = vpop.f32.mrb[21].mxu0  ;;  %v3515_v25 = vpop.f32.mrb[20].mxu1 }
 0x1be   :  { %v3495_v26 = vadd.f32 %v3494_v24, %v3493_v23  ;;  %v3496_v27 = vpop.f32.mrb[22].mxu0  ;;  %v3516_v28 = vpop.f32.mrb[21].mxu1 }
 0x1bf   :  { %v3497_v29 = vpop.f32.mrb[23].mxu0  ;;  %v3517_v31 = vadd.f32 %v3516_v28, %v3515_v25  ;;  %v3518_v32 = vpop.f32.mrb[22].mxu1 }
 0x1c0   :  { %v2751_v30 = vadd.f32 %v3495_v26, %v2711_v22  ;;  %v3519_v33 = vpop.f32.mrb[23].mxu1 }
 0x1c2   :  { %v2791_v34 = vadd.f32 %v3517_v31, %v2751_v30 }
 0x1dc   :  { %v3537_v36 = vpop.f32.mrb[24].mxu0 }
 0x1dd   :  { %v3538_v37 = vpop.f32.mrb[25].mxu0  ;;  %v3559_v38 = vpop.f32.mrb[24].mxu1 }
 0x1de   :  { %v3539_v39 = vadd.f32 %v3538_v37, %v3537_v36  ;;  %v3540_v40 = vpop.f32.mrb[26].mxu0  ;;  %v3560_v41 = vpop.f32.mrb[25].mxu1 }
 0x1df   :  { %v3541_v42 = vpop.f32.mrb[27].mxu0  ;;  %v3561_v44 = vadd.f32 %v3560_v41, %v3559_v38  ;;  %v3562_v45 = vpop.f32.mrb[26].mxu1 }
 0x1e0   :  { %v2831_v43 = vadd.f32 %v3539_v39, %v2791_v34  ;;  %v3563_v46 = vpop.f32.mrb[27].mxu1 }
 0x1e2   :  { %v2871_v47 = vadd.f32 %v3561_v44, %v2831_v43 }
 0x1fc   :  { %v3581_v35 = vpop.f32.mrb[28].mxu0 }
 0x1fd   :  { %v3582_v48 = vpop.f32.mrb[29].mxu0  ;;  %v3603_v49 = vpop.f32.mrb[28].mxu1 }
 0x1fe   :  { %v3583_v50 = vadd.f32 %v3582_v48, %v3581_v35  ;;  %v3584_v51 = vpop.f32.mrb[30].mxu0  ;;  %v3604_v52 = vpop.f32.mrb[29].mxu1 }
 0x1ff   :  { %v3585_v53 = vpop.f32.mrb[31].mxu0  ;;  %v3605_v55 = vadd.f32 %v3604_v52, %v3603_v49  ;;  %v3606_v56 = vpop.f32.mrb[30].mxu1 }
 0x200   :  { %v2911_v54 = vadd.f32 %v3583_v50, %v2871_v47  ;;  %v3607_v57 = vpop.f32.mrb[31].mxu1 }
 0x202   :  { %v2951_v58 = vadd.f32 %v3605_v55, %v2911_v54 }
 0x204   :  { %2956 = vst [vmem:[#allocation7] sm:$0x3] %v2951_v58  ;;  %v2958_v59 = vsel %vm2957_vm0, %v2951_v58, -inf }
 0x205   :  { %2959 = vmax.xlane.f32.xlu0 %v2958_v59 }
 0x292   :  { %v2960_v60 = vpop.xlane.xlu0 %2959 }
 0x293   :  { %v2961_v61 = vsub.f32 %v2951_v58, %v2960_v60 }
 0x295   :  { %v2962_v62 = vmul.f32 1.442695, %v2961_v61 }
 0x297   :  { %3880 = vpow2.f32 %v2962_v62 }
 0x2a1   :  { %v3881_v63 = vpop.eup %3880 }
 0x2a2   :  { %v2964_v0 = vsel %vm2957_vm0, %v3881_v63, 0.0 }
 0x2a3   :  { %2965 = vadd.xlane.f32.xlu0 %v2964_v0 }
 0x2a4   :  { %3939 = shalt.err (!%p3936_p6)
}
 0x2a5   :  { %s3940_s19 = scalar_lea.hbm %s4091_s3, 32 }
 0x2a6   :  { %p3941_p7 = scmp.ne.s32.totalorder %s4091_s3, %s3940_s19  ;;  %p3944_p8 = scmp.lt.u32.totalorder %s3940_s19, %s4091_s3 }
 0x2a8   :  { %p3946_p9 = pnand %p3944_p8, %p3941_p7 }
 0x2aa   :  { %3949 = shalt.err (!%p3946_p9)
}
 0x2ab   :  { %2979 = dma.vmem_to_hbm [thread:$0]  %s2977_s15, 32, %s4091_s3, [#allocation4]  }
 0x2ac   :  { %s3986_s26 = smov [#allocation8]  }
 0x2ad   :  { %s2986_s27 = sshll.u32 %s3986_s26, 4  ;;  %s2987_s27 = int_to_ptr.vmem [resolvable:$true] %s2986_s27 }
 0x2ae   :  { %s3950_s28 = scalar_lea.vmem %s2987_s27, 32  ;;  %p3955_p11 = scmp.lt.s32.totalorder %s2987_s27, %s2987_s27 }
 0x2af   :  { %p3951_p10 = scmp.ne.s32.totalorder %s2987_s27, %s3950_s28  ;;  %p3956_p12 = scmp.lt.s32.totalorder %s3950_s28, %s3950_s28 }
 0x2b1   :  { %p3957_p13 = por %p3956_p12, %p3955_p11 }
 0x2b3   :  { %p3958_p0 = pnand %p3957_p13, %p3951_p10 }
 0x330   :  { %v2966_v1 = vpop.xlane.xlu0 %2965 }
 0x331   :  { %3882 = vrcp.f32 %v2966_v1 }
 0x33b   :  { %v3883_v2 = vpop.eup %3882 }
 0x33c   :  { %v2968_v3 = vmul.f32 %v3883_v2, %v3881_v63 }
 0x33e   :  { %2969 = vst [vmem:[#allocation8] sm:$0x3] %v2968_v3 }
 0x33f   :  { %3961 = shalt.err (!%p3958_p0)
}
 0x340   :  { %s3962_s5 = scalar_lea.hbm %s4092_s4, 32 }
 0x341   :  { %p3963_p1 = scmp.ne.s32.totalorder %s4092_s4, %s3962_s5  ;;  %p3966_p2 = scmp.lt.u32.totalorder %s3962_s5, %s4092_s4 }
 0x343   :  { %p3968_p3 = pnand %p3966_p2, %p3963_p1 }
 0x345   :  { %3971 = shalt.err (!%p3968_p3)
}
 0x346   :  { %2989 = dma.vmem_to_hbm [thread:$0]  %s2987_s27, 32, %s4092_s4, [#allocation9]  }
 0x347   :  { %3976 = dma.done.wait [#allocation4], 32  }
 0x348   :  { %3977 = vsyncadd [#allocation4], 4294967264 }
 0x349   :  { %3978 = dma.done.wait [#allocation9], 32  }
 0x34a   :  { %3979 = vsyncadd [#allocation9], 4294967264 }
 0x34b   :  { %2996 = vsyncpa [#allocation3], 1 }
 0x34c   :  { %2997 = vsyncpa [#allocation6], 1 }
 0x34d   :  { %2998 = vsyncpa [#allocation4], 1 }
 0x34e   :  { %2999 = vsyncpa [#allocation9], 1 }

</bundles_post_ra>
